<compile_context>
chip_gen: v7x
topology: tpu7x:2x2x1
jax: 0.10.0
libtpu: 0.0.40
codegen_flags: <defaults>
</compile_context>

<pallas_src>
import functools

import jax
import jax.numpy as jnp
from jax.experimental import pallas as pl
from jax.experimental.pallas import tpu as pltpu


def _sigmoid(z):
    return 1.0 / (1.0 + jnp.exp(-z))


def _csa_kernel(W, wsp_ref, wf_ref, wb_ref, mask_ref, x_ref, out_ref, pad_ref):
    # x_ref block: (Nb, C, HW) lane-dense f32.
    # pad_ref scratch: (2, Nb, P) with P = HW + 6*W + 6 -- flat avg/max maps,
    # zero-padded by 3 rows (3*W+3 elements) on each end.
    Nb, C, HW = x_ref.shape
    P = pad_ref.shape[-1]
    OFF = 3 * W + 3                       # interior offset inside the scratch

    x = x_ref[...].astype(jnp.float32)    # (Nb, C, HW)

    # ---- channel mean / max over C (lane-dense) ---------------------------
    avg = jnp.mean(x, axis=1)             # (Nb, HW)
    mx = jnp.max(x, axis=1)               # (Nb, HW)

    # ---- refresh flat padded scratch --------------------------------------
    # Only the thin zero borders are rewritten; the interior is overwritten
    # every step (safe under megacore "parallel" grid splitting).
    pad_ref[:, :, 0:OFF] = jnp.zeros((2, Nb, OFF), jnp.float32)
    pad_ref[:, :, OFF + HW:P] = jnp.zeros((2, Nb, P - OFF - HW), jnp.float32)
    pad_ref[0, :, OFF:OFF + HW] = avg
    pad_ref[1, :, OFF:OFF + HW] = mx
    padded = pad_ref[...]                 # (2, Nb, P)

    # ---- 7x7 spatial-attention conv, fully lane-dense ---------------------
    # For tap (c, di, dj), the contribution to flat output position p=i*W+j is
    #   w * padded[c, :, OFF + (di-3)*W + (dj-3) + p]
    # which is exact except when column j+dj-3 leaves [0, W); those lanes are
    # zeroed by the per-shift mask mask_ref[dj].
    acc = jnp.zeros((Nb, HW), jnp.float32)
    for dj in range(7):                   # 7 independent partial-sum chains
        s = dj - 3
        acc_s = jnp.zeros((Nb, HW), jnp.float32)
        for c in range(2):                # 2 input channels: [avg, max]
            pc = padded[c]                # (Nb, P)
            for di in range(7):
                w = wsp_ref[c * 49 + di * 7 + dj]      # scalar from SMEM
                start = OFF + (di - 3) * W + s
                acc_s = acc_s + w * pc[:, start:start + HW]
        acc = acc + acc_s * mask_ref[dj:dj + 1, :]     # (Nb,HW) * (1,HW)
    spatial_w = _sigmoid(acc)                          # (Nb, HW)

    # ---- channel attention (collapses to one scalar per batch element) ----
    m = jnp.mean(avg, axis=1, keepdims=True)           # (Nb, 1): mean over C,H,W
    cw = 0.5 * (_sigmoid(wf_ref[1] * m) + _sigmoid(wb_ref[1] * m))  # (Nb, 1)

    # ---- gate and store (lane-dense, unmasked vst) -------------------------
    gate = spatial_w * cw                              # (Nb, HW)
    out_ref[...] = (x * gate[:, None, :]).astype(out_ref.dtype)


def csa_pallas(x, w_spatial, w_ca_fwd, w_ca_bwd, *, block_bytes=2 * 1024 * 1024):
    N, C, H, W = x.shape
    HW = H * W
    P = HW + 6 * W + 6

    x_flat = x.reshape(N, C, HW)                        # free, contiguous
    wsp = w_spatial.reshape(-1).astype(jnp.float32)     # (2*7*7,) = (98,)
    wf = w_ca_fwd.reshape(-1).astype(jnp.float32)       # (3,)
    wb = w_ca_bwd.reshape(-1).astype(jnp.float32)       # (3,)

    # Per-column-shift validity masks for the flat conv (built once, tiny).
    col = jnp.arange(HW, dtype=jnp.int32) % W
    col_mask = jnp.stack(
        [((col + s >= 0) & (col + s < W)).astype(jnp.float32)
         for s in range(-3, 4)], axis=0)                # (7, HW)

    # Batch several examples per grid step; keep in+out double-buffered blocks
    # (~4 * block_bytes) well inside the scoped-VMEM default, which also fits
    # v7x's smaller VMEM without raising vmem_limit_bytes.
    bytes_per_n = C * HW * x.dtype.itemsize
    max_nb = max(1, block_bytes // bytes_per_n)
    Nb = 1
    for d in range(1, N + 1):
        if N % d == 0 and d <= max_nb:
            Nb = d
    grid = (N // Nb,)

    kernel = functools.partial(_csa_kernel, W)
    grid_spec = pltpu.PrefetchScalarGridSpec(
        num_scalar_prefetch=0,
        grid=grid,
        in_specs=[
            pl.BlockSpec(memory_space=pltpu.MemorySpace.SMEM),   # spatial conv w
            pl.BlockSpec(memory_space=pltpu.MemorySpace.SMEM),   # fwd conv1d w
            pl.BlockSpec(memory_space=pltpu.MemorySpace.SMEM),   # bwd conv1d w
            pl.BlockSpec((7, HW), lambda n: (0, 0)),             # column masks
            pl.BlockSpec((Nb, C, HW), lambda n: (n, 0, 0)),      # x (lane-dense)
        ],
        out_specs=pl.BlockSpec((Nb, C, HW), lambda n: (n, 0, 0)),
        scratch_shapes=[pltpu.VMEM((2, Nb, P), jnp.float32)],
    )
    out_flat = pl.pallas_call(
        kernel,
        out_shape=jax.ShapeDtypeStruct((N, C, HW), x.dtype),
        grid_spec=grid_spec,
        compiler_params=pltpu.CompilerParams(
            dimension_semantics=("parallel",)),
    )(wsp, wf, wb, col_mask, x_flat)
    return out_flat.reshape(N, C, H, W)


def csa_reference(x, w_spatial, w_ca_fwd, w_ca_bwd):
    # Pure-JAX re-implementation of the PyTorch forward (verification only).
    avg = jnp.mean(x, axis=1, keepdims=True)
    mx = jnp.max(x, axis=1, keepdims=True)
    sw_in = jnp.concatenate([avg, mx], axis=1)                     # (N,2,H,W)
    sw = jax.lax.conv_general_dilated(
        sw_in, w_spatial, window_strides=(1, 1), padding=((3, 3), (3, 3)),
        dimension_numbers=("NCHW", "OIHW", "NCHW"))
    sw = _sigmoid(sw)                                              # (N,1,H,W)

    y = jnp.mean(x, axis=(2, 3))                                   # (N, C)
    pooled = jnp.mean(y, axis=1)                                   # (N,)  AdaptiveAvgPool2d on (N,1,C)
    yf = _sigmoid(w_ca_fwd[0, 0, 1] * pooled)                      # conv1d on length-1 input
    yb = _sigmoid(w_ca_bwd[0, 0, 1] * pooled)
    cw = 0.5 * (yf + yb)                                           # (N,)
    return x * sw * cw[:, None, None, None]


if __name__ == "__main__":
    key = jax.random.PRNGKey(0)
    kx, k1, k2, k3 = jax.random.split(key, 4)

    N, C, H, W = 2, 4, 16, 16
    x = jax.random.normal(kx, (N, C, H, W), dtype=jnp.float32)
    w_spatial = 0.1 * jax.random.normal(k1, (1, 2, 7, 7), dtype=jnp.float32)  # Conv2d(2,1,7)
    w_ca_fwd = 0.5 * jax.random.normal(k2, (1, 1, 3), dtype=jnp.float32)      # Conv1d(1,1,3)
    w_ca_bwd = 0.5 * jax.random.normal(k3, (1, 1, 3), dtype=jnp.float32)      # Conv1d(1,1,3)

    out = csa_pallas(x, w_spatial, w_ca_fwd, w_ca_bwd)
    out = jax.block_until_ready(out)

    ref = csa_reference(x, w_spatial, w_ca_fwd, w_ca_bwd)
    assert out.shape == ref.shape and out.dtype == ref.dtype
    max_err = float(jnp.max(jnp.abs(out - ref)))
    if max_err > 1e-4:
        raise AssertionError(f"mismatch vs reference: max abs err = {max_err}")
    print("KERNEL_OK")
</pallas_src>

<mosaic_0001>
module attributes {stable_mosaic.version = 11 : i64} {
  func.func @_csa_kernel(%arg0: i32, %arg1: memref<98xf32, #tpu.memory_space<smem>>, %arg2: memref<3xf32, #tpu.memory_space<smem>>, %arg3: memref<3xf32, #tpu.memory_space<smem>>, %arg4: memref<7x256xf32, #tpu.memory_space<vmem>>, %arg5: memref<2x4x256xf32, #tpu.memory_space<vmem>>, %arg6: memref<2x4x256xf32, #tpu.memory_space<vmem>>, %arg7: memref<2x2x358xf32, #tpu.memory_space<vmem>>) attributes {dimension_semantics = [#tpu.dimension_semantics<parallel>], iteration_bounds = array<i64: 1>, scalar_prefetch = 0 : i64, scratch_operands = 1 : i64, tpu.core_type = #tpu.core_type<tc>, window_params = [{transform_indices = @transform_0, window_bounds = array<i64: 98>}, {transform_indices = @transform_1, window_bounds = array<i64: 3>}, {transform_indices = @transform_2, window_bounds = array<i64: 3>}, {pipeline_mode = #tpu.pipeline_mode<synchronous>, transform_indices = @transform_3, window_bounds = array<i64: 7, 256>}, {transform_indices = @transform_4, window_bounds = array<i64: 2, 4, 256>}, {transform_indices = @transform_5, window_bounds = array<i64: 2, 4, 256>}]} {
    %c0 = arith.constant 0 : index
    %c0_0 = arith.constant 0 : index
    %c0_1 = arith.constant 0 : index
    %0 = vector.load %arg5[%c0, %c0_0, %c0_1] : memref<2x4x256xf32, #tpu.memory_space<vmem>>, vector<2x4x256xf32>
    %cst = arith.constant dense<0.000000e+00> : vector<2x256xf32>
    %1 = vector.multi_reduction <add>, %0, %cst [1] : vector<2x4x256xf32> to vector<2x256xf32>
    %cst_2 = arith.constant 4.000000e+00 : f32
    %2 = vector.broadcast %cst_2 : f32 to vector<2x256xf32>
    %3 = arith.divf %1, %2 : vector<2x256xf32>
    %cst_3 = arith.constant dense<0xFF800000> : vector<2x256xf32>
    %4 = vector.multi_reduction <maximumf>, %0, %cst_3 [1] : vector<2x4x256xf32> to vector<2x256xf32>
    %cst_4 = arith.constant 0.000000e+00 : f32
    %5 = vector.broadcast %cst_4 : f32 to vector<2x2x51xf32>
    %c0_5 = arith.constant 0 : index
    %c0_6 = arith.constant 0 : index
    %c0_7 = arith.constant 0 : index
    %6 = vector.load %arg7[%c0_5, %c0_6, %c0_7] : memref<2x2x358xf32, #tpu.memory_space<vmem>>, vector<2x2x51xf32>
    tpu.vector_store %arg7[%c0_5, %c0_6, %c0_7], %5 {strides = array<i32>} : memref<2x2x358xf32, #tpu.memory_space<vmem>>, vector<2x2x51xf32>,
    %cst_8 = arith.constant 0.000000e+00 : f32
    %7 = vector.broadcast %cst_8 : f32 to vector<2x2x51xf32>
    %c0_9 = arith.constant 0 : index
    %c0_10 = arith.constant 0 : index
    %c307 = arith.constant 307 : index
    %8 = vector.load %arg7[%c0_9, %c0_10, %c307] : memref<2x2x358xf32, #tpu.memory_space<vmem>>, vector<2x2x51xf32>
    tpu.vector_store %arg7[%c0_9, %c0_10, %c307], %7 {strides = array<i32>} : memref<2x2x358xf32, #tpu.memory_space<vmem>>, vector<2x2x51xf32>,
    %c0_11 = arith.constant 0 : index
    %c0_12 = arith.constant 0 : index
    %c51 = arith.constant 51 : index
    %9 = vector.load %arg7[%c0_11, %c0_12, %c51] : memref<2x2x358xf32, #tpu.memory_space<vmem>>, vector<1x2x256xf32>
    %10 = vector.shape_cast %9 : vector<1x2x256xf32> to vector<2x256xf32>
    %11 = vector.shape_cast %3 : vector<2x256xf32> to vector<1x2x256xf32>
    tpu.vector_store %arg7[%c0_11, %c0_12, %c51], %11 {strides = array<i32>} : memref<2x2x358xf32, #tpu.memory_space<vmem>>, vector<1x2x256xf32>,
    %c1 = arith.constant 1 : index
    %c0_13 = arith.constant 0 : index
    %c51_14 = arith.constant 51 : index
    %12 = vector.load %arg7[%c1, %c0_13, %c51_14] : memref<2x2x358xf32, #tpu.memory_space<vmem>>, vector<1x2x256xf32>
    %13 = vector.shape_cast %12 : vector<1x2x256xf32> to vector<2x256xf32>
    %14 = vector.shape_cast %4 : vector<2x256xf32> to vector<1x2x256xf32>
    tpu.vector_store %arg7[%c1, %c0_13, %c51_14], %14 {strides = array<i32>} : memref<2x2x358xf32, #tpu.memory_space<vmem>>, vector<1x2x256xf32>,
    %c0_15 = arith.constant 0 : index
    %c0_16 = arith.constant 0 : index
    %c0_17 = arith.constant 0 : index
    %15 = vector.load %arg7[%c0_15, %c0_16, %c0_17] : memref<2x2x358xf32, #tpu.memory_space<vmem>>, vector<2x2x358xf32>
    %cst_18 = arith.constant 0.000000e+00 : f32
    %16 = vector.broadcast %cst_18 : f32 to vector<2x256xf32>
    %cst_19 = arith.constant 0.000000e+00 : f32
    %17 = vector.broadcast %cst_19 : f32 to vector<2x256xf32>
    %18 = vector.extract_strided_slice %15 {offsets = [0, 0, 0], sizes = [1, 2, 358], strides = [1, 1, 1]} : vector<2x2x358xf32> to vector<1x2x358xf32>
    %19 = vector.shape_cast %18 : vector<1x2x358xf32> to vector<2x358xf32>
    %c0_20 = arith.constant 0 : index
    %20 = memref.load %arg1[%c0_20] : memref<98xf32, #tpu.memory_space<smem>>
    %21 = vector.extract_strided_slice %19 {offsets = [0, 0], sizes = [2, 256], strides = [1, 1]} : vector<2x358xf32> to vector<2x256xf32>
    %22 = vector.broadcast %20 : f32 to vector<2x256xf32>
    %23 = arith.mulf %22, %21 : vector<2x256xf32>
    %24 = arith.addf %17, %23 : vector<2x256xf32>
    %c7 = arith.constant 7 : index
    %25 = memref.load %arg1[%c7] : memref<98xf32, #tpu.memory_space<smem>>
    %26 = vector.extract_strided_slice %19 {offsets = [0, 16], sizes = [2, 256], strides = [1, 1]} : vector<2x358xf32> to vector<2x256xf32>
    %27 = vector.broadcast %25 : f32 to vector<2x256xf32>
    %28 = arith.mulf %27, %26 : vector<2x256xf32>
    %29 = arith.addf %24, %28 : vector<2x256xf32>
    %c14 = arith.constant 14 : index
    %30 = memref.load %arg1[%c14] : memref<98xf32, #tpu.memory_space<smem>>
    %31 = vector.extract_strided_slice %19 {offsets = [0, 32], sizes = [2, 256], strides = [1, 1]} : vector<2x358xf32> to vector<2x256xf32>
    %32 = vector.broadcast %30 : f32 to vector<2x256xf32>
    %33 = arith.mulf %32, %31 : vector<2x256xf32>
    %34 = arith.addf %29, %33 : vector<2x256xf32>
    %c21 = arith.constant 21 : index
    %35 = memref.load %arg1[%c21] : memref<98xf32, #tpu.memory_space<smem>>
    %36 = vector.extract_strided_slice %19 {offsets = [0, 48], sizes = [2, 256], strides = [1, 1]} : vector<2x358xf32> to vector<2x256xf32>
    %37 = vector.broadcast %35 : f32 to vector<2x256xf32>
    %38 = arith.mulf %37, %36 : vector<2x256xf32>
    %39 = arith.addf %34, %38 : vector<2x256xf32>
    %c28 = arith.constant 28 : index
    %40 = memref.load %arg1[%c28] : memref<98xf32, #tpu.memory_space<smem>>
    %41 = vector.extract_strided_slice %19 {offsets = [0, 64], sizes = [2, 256], strides = [1, 1]} : vector<2x358xf32> to vector<2x256xf32>
    %42 = vector.broadcast %40 : f32 to vector<2x256xf32>
    %43 = arith.mulf %42, %41 : vector<2x256xf32>
    %44 = arith.addf %39, %43 : vector<2x256xf32>
    %c35 = arith.constant 35 : index
    %45 = memref.load %arg1[%c35] : memref<98xf32, #tpu.memory_space<smem>>
    %46 = vector.extract_strided_slice %19 {offsets = [0, 80], sizes = [2, 256], strides = [1, 1]} : vector<2x358xf32> to vector<2x256xf32>
    %47 = vector.broadcast %45 : f32 to vector<2x256xf32>
    %48 = arith.mulf %47, %46 : vector<2x256xf32>
    %49 = arith.addf %44, %48 : vector<2x256xf32>
    %c42 = arith.constant 42 : index
    %50 = memref.load %arg1[%c42] : memref<98xf32, #tpu.memory_space<smem>>
    %51 = vector.extract_strided_slice %19 {offsets = [0, 96], sizes = [2, 256], strides = [1, 1]} : vector<2x358xf32> to vector<2x256xf32>
    %52 = vector.broadcast %50 : f32 to vector<2x256xf32>
    %53 = arith.mulf %52, %51 : vector<2x256xf32>
    %54 = arith.addf %49, %53 : vector<2x256xf32>
    %55 = vector.extract_strided_slice %15 {offsets = [1, 0, 0], sizes = [1, 2, 358], strides = [1, 1, 1]} : vector<2x2x358xf32> to vector<1x2x358xf32>
    %56 = vector.shape_cast %55 : vector<1x2x358xf32> to vector<2x358xf32>
    %c49 = arith.constant 49 : index
    %57 = memref.load %arg1[%c49] : memref<98xf32, #tpu.memory_space<smem>>
    %58 = vector.extract_strided_slice %56 {offsets = [0, 0], sizes = [2, 256], strides = [1, 1]} : vector<2x358xf32> to vector<2x256xf32>
    %59 = vector.broadcast %57 : f32 to vector<2x256xf32>
    %60 = arith.mulf %59, %58 : vector<2x256xf32>
    %61 = arith.addf %54, %60 : vector<2x256xf32>
    %c56 = arith.constant 56 : index
    %62 = memref.load %arg1[%c56] : memref<98xf32, #tpu.memory_space<smem>>
    %63 = vector.extract_strided_slice %56 {offsets = [0, 16], sizes = [2, 256], strides = [1, 1]} : vector<2x358xf32> to vector<2x256xf32>
    %64 = vector.broadcast %62 : f32 to vector<2x256xf32>
    %65 = arith.mulf %64, %63 : vector<2x256xf32>
    %66 = arith.addf %61, %65 : vector<2x256xf32>
    %c63 = arith.constant 63 : index
    %67 = memref.load %arg1[%c63] : memref<98xf32, #tpu.memory_space<smem>>
    %68 = vector.extract_strided_slice %56 {offsets = [0, 32], sizes = [2, 256], strides = [1, 1]} : vector<2x358xf32> to vector<2x256xf32>
    %69 = vector.broadcast %67 : f32 to vector<2x256xf32>
    %70 = arith.mulf %69, %68 : vector<2x256xf32>
    %71 = arith.addf %66, %70 : vector<2x256xf32>
    %c70 = arith.constant 70 : index
    %72 = memref.load %arg1[%c70] : memref<98xf32, #tpu.memory_space<smem>>
    %73 = vector.extract_strided_slice %56 {offsets = [0, 48], sizes = [2, 256], strides = [1, 1]} : vector<2x358xf32> to vector<2x256xf32>
    %74 = vector.broadcast %72 : f32 to vector<2x256xf32>
    %75 = arith.mulf %74, %73 : vector<2x256xf32>
    %76 = arith.addf %71, %75 : vector<2x256xf32>
    %c77 = arith.constant 77 : index
    %77 = memref.load %arg1[%c77] : memref<98xf32, #tpu.memory_space<smem>>
    %78 = vector.extract_strided_slice %56 {offsets = [0, 64], sizes = [2, 256], strides = [1, 1]} : vector<2x358xf32> to vector<2x256xf32>
    %79 = vector.broadcast %77 : f32 to vector<2x256xf32>
    %80 = arith.mulf %79, %78 : vector<2x256xf32>
    %81 = arith.addf %76, %80 : vector<2x256xf32>
    %c84 = arith.constant 84 : index
    %82 = memref.load %arg1[%c84] : memref<98xf32, #tpu.memory_space<smem>>
    %83 = vector.extract_strided_slice %56 {offsets = [0, 80], sizes = [2, 256], strides = [1, 1]} : vector<2x358xf32> to vector<2x256xf32>
    %84 = vector.broadcast %82 : f32 to vector<2x256xf32>
    %85 = arith.mulf %84, %83 : vector<2x256xf32>
    %86 = arith.addf %81, %85 : vector<2x256xf32>
    %c91 = arith.constant 91 : index
    %87 = memref.load %arg1[%c91] : memref<98xf32, #tpu.memory_space<smem>>
    %88 = vector.extract_strided_slice %56 {offsets = [0, 96], sizes = [2, 256], strides = [1, 1]} : vector<2x358xf32> to vector<2x256xf32>
    %89 = vector.broadcast %87 : f32 to vector<2x256xf32>
    %90 = arith.mulf %89, %88 : vector<2x256xf32>
    %91 = arith.addf %86, %90 : vector<2x256xf32>
    %c0_21 = arith.constant 0 : index
    %c0_22 = arith.constant 0 : index
    %92 = vector.load %arg4[%c0_21, %c0_22] : memref<7x256xf32, #tpu.memory_space<vmem>>, vector<1x256xf32>
    %93 = vector.broadcast %92 : vector<1x256xf32> to vector<2x256xf32>
    %94 = arith.mulf %91, %93 : vector<2x256xf32>
    %95 = arith.addf %16, %94 : vector<2x256xf32>
    %cst_23 = arith.constant 0.000000e+00 : f32
    %96 = vector.broadcast %cst_23 : f32 to vector<2x256xf32>
    %97 = vector.extract_strided_slice %15 {offsets = [0, 0, 0], sizes = [1, 2, 358], strides = [1, 1, 1]} : vector<2x2x358xf32> to vector<1x2x358xf32>
    %98 = vector.shape_cast %97 : vector<1x2x358xf32> to vector<2x358xf32>
    %c1_24 = arith.constant 1 : index
    %99 = memref.load %arg1[%c1_24] : memref<98xf32, #tpu.memory_space<smem>>
    %100 = vector.extract_strided_slice %98 {offsets = [0, 1], sizes = [2, 256], strides = [1, 1]} : vector<2x358xf32> to vector<2x256xf32>
    %101 = vector.broadcast %99 : f32 to vector<2x256xf32>
    %102 = arith.mulf %101, %100 : vector<2x256xf32>
    %103 = arith.addf %96, %102 : vector<2x256xf32>
    %c8 = arith.constant 8 : index
    %104 = memref.load %arg1[%c8] : memref<98xf32, #tpu.memory_space<smem>>
    %105 = vector.extract_strided_slice %98 {offsets = [0, 17], sizes = [2, 256], strides = [1, 1]} : vector<2x358xf32> to vector<2x256xf32>
    %106 = vector.broadcast %104 : f32 to vector<2x256xf32>
    %107 = arith.mulf %106, %105 : vector<2x256xf32>
    %108 = arith.addf %103, %107 : vector<2x256xf32>
    %c15 = arith.constant 15 : index
    %109 = memref.load %arg1[%c15] : memref<98xf32, #tpu.memory_space<smem>>
    %110 = vector.extract_strided_slice %98 {offsets = [0, 33], sizes = [2, 256], strides = [1, 1]} : vector<2x358xf32> to vector<2x256xf32>
    %111 = vector.broadcast %109 : f32 to vector<2x256xf32>
    %112 = arith.mulf %111, %110 : vector<2x256xf32>
    %113 = arith.addf %108, %112 : vector<2x256xf32>
    %c22 = arith.constant 22 : index
    %114 = memref.load %arg1[%c22] : memref<98xf32, #tpu.memory_space<smem>>
    %115 = vector.extract_strided_slice %98 {offsets = [0, 49], sizes = [2, 256], strides = [1, 1]} : vector<2x358xf32> to vector<2x256xf32>
    %116 = vector.broadcast %114 : f32 to vector<2x256xf32>
    %117 = arith.mulf %116, %115 : vector<2x256xf32>
    %118 = arith.addf %113, %117 : vector<2x256xf32>
    %c29 = arith.constant 29 : index
    %119 = memref.load %arg1[%c29] : memref<98xf32, #tpu.memory_space<smem>>
    %120 = vector.extract_strided_slice %98 {offsets = [0, 65], sizes = [2, 256], strides = [1, 1]} : vector<2x358xf32> to vector<2x256xf32>
    %121 = vector.broadcast %119 : f32 to vector<2x256xf32>
    %122 = arith.mulf %121, %120 : vector<2x256xf32>
    %123 = arith.addf %118, %122 : vector<2x256xf32>
    %c36 = arith.constant 36 : index
    %124 = memref.load %arg1[%c36] : memref<98xf32, #tpu.memory_space<smem>>
    %125 = vector.extract_strided_slice %98 {offsets = [0, 81], sizes = [2, 256], strides = [1, 1]} : vector<2x358xf32> to vector<2x256xf32>
    %126 = vector.broadcast %124 : f32 to vector<2x256xf32>
    %127 = arith.mulf %126, %125 : vector<2x256xf32>
    %128 = arith.addf %123, %127 : vector<2x256xf32>
    %c43 = arith.constant 43 : index
    %129 = memref.load %arg1[%c43] : memref<98xf32, #tpu.memory_space<smem>>
    %130 = vector.extract_strided_slice %98 {offsets = [0, 97], sizes = [2, 256], strides = [1, 1]} : vector<2x358xf32> to vector<2x256xf32>
    %131 = vector.broadcast %129 : f32 to vector<2x256xf32>
    %132 = arith.mulf %131, %130 : vector<2x256xf32>
    %133 = arith.addf %128, %132 : vector<2x256xf32>
    %134 = vector.extract_strided_slice %15 {offsets = [1, 0, 0], sizes = [1, 2, 358], strides = [1, 1, 1]} : vector<2x2x358xf32> to vector<1x2x358xf32>
    %135 = vector.shape_cast %134 : vector<1x2x358xf32> to vector<2x358xf32>
    %c50 = arith.constant 50 : index
    %136 = memref.load %arg1[%c50] : memref<98xf32, #tpu.memory_space<smem>>
    %137 = vector.extract_strided_slice %135 {offsets = [0, 1], sizes = [2, 256], strides = [1, 1]} : vector<2x358xf32> to vector<2x256xf32>
    %138 = vector.broadcast %136 : f32 to vector<2x256xf32>
    %139 = arith.mulf %138, %137 : vector<2x256xf32>
    %140 = arith.addf %133, %139 : vector<2x256xf32>
    %c57 = arith.constant 57 : index
    %141 = memref.load %arg1[%c57] : memref<98xf32, #tpu.memory_space<smem>>
    %142 = vector.extract_strided_slice %135 {offsets = [0, 17], sizes = [2, 256], strides = [1, 1]} : vector<2x358xf32> to vector<2x256xf32>
    %143 = vector.broadcast %141 : f32 to vector<2x256xf32>
    %144 = arith.mulf %143, %142 : vector<2x256xf32>
    %145 = arith.addf %140, %144 : vector<2x256xf32>
    %c64 = arith.constant 64 : index
    %146 = memref.load %arg1[%c64] : memref<98xf32, #tpu.memory_space<smem>>
    %147 = vector.extract_strided_slice %135 {offsets = [0, 33], sizes = [2, 256], strides = [1, 1]} : vector<2x358xf32> to vector<2x256xf32>
    %148 = vector.broadcast %146 : f32 to vector<2x256xf32>
    %149 = arith.mulf %148, %147 : vector<2x256xf32>
    %150 = arith.addf %145, %149 : vector<2x256xf32>
    %c71 = arith.constant 71 : index
    %151 = memref.load %arg1[%c71] : memref<98xf32, #tpu.memory_space<smem>>
    %152 = vector.extract_strided_slice %135 {offsets = [0, 49], sizes = [2, 256], strides = [1, 1]} : vector<2x358xf32> to vector<2x256xf32>
    %153 = vector.broadcast %151 : f32 to vector<2x256xf32>
    %154 = arith.mulf %153, %152 : vector<2x256xf32>
    %155 = arith.addf %150, %154 : vector<2x256xf32>
    %c78 = arith.constant 78 : index
    %156 = memref.load %arg1[%c78] : memref<98xf32, #tpu.memory_space<smem>>
    %157 = vector.extract_strided_slice %135 {offsets = [0, 65], sizes = [2, 256], strides = [1, 1]} : vector<2x358xf32> to vector<2x256xf32>
    %158 = vector.broadcast %156 : f32 to vector<2x256xf32>
    %159 = arith.mulf %158, %157 : vector<2x256xf32>
    %160 = arith.addf %155, %159 : vector<2x256xf32>
    %c85 = arith.constant 85 : index
    %161 = memref.load %arg1[%c85] : memref<98xf32, #tpu.memory_space<smem>>
    %162 = vector.extract_strided_slice %135 {offsets = [0, 81], sizes = [2, 256], strides = [1, 1]} : vector<2x358xf32> to vector<2x256xf32>
    %163 = vector.broadcast %161 : f32 to vector<2x256xf32>
    %164 = arith.mulf %163, %162 : vector<2x256xf32>
    %165 = arith.addf %160, %164 : vector<2x256xf32>
    %c92 = arith.constant 92 : index
    %166 = memref.load %arg1[%c92] : memref<98xf32, #tpu.memory_space<smem>>
    %167 = vector.extract_strided_slice %135 {offsets = [0, 97], sizes = [2, 256], strides = [1, 1]} : vector<2x358xf32> to vector<2x256xf32>
    %168 = vector.broadcast %166 : f32 to vector<2x256xf32>
    %169 = arith.mulf %168, %167 : vector<2x256xf32>
    %170 = arith.addf %165, %169 : vector<2x256xf32>
    %c1_25 = arith.constant 1 : index
    %c0_26 = arith.constant 0 : index
    %171 = vector.load %arg4[%c1_25, %c0_26] : memref<7x256xf32, #tpu.memory_space<vmem>>, vector<1x256xf32>
    %172 = vector.broadcast %171 : vector<1x256xf32> to vector<2x256xf32>
    %173 = arith.mulf %170, %172 : vector<2x256xf32>
    %174 = arith.addf %95, %173 : vector<2x256xf32>
    %cst_27 = arith.constant 0.000000e+00 : f32
    %175 = vector.broadcast %cst_27 : f32 to vector<2x256xf32>
    %176 = vector.extract_strided_slice %15 {offsets = [0, 0, 0], sizes = [1, 2, 358], strides = [1, 1, 1]} : vector<2x2x358xf32> to vector<1x2x358xf32>
    %177 = vector.shape_cast %176 : vector<1x2x358xf32> to vector<2x358xf32>
    %c2 = arith.constant 2 : index
    %178 = memref.load %arg1[%c2] : memref<98xf32, #tpu.memory_space<smem>>
    %179 = vector.extract_strided_slice %177 {offsets = [0, 2], sizes = [2, 256], strides = [1, 1]} : vector<2x358xf32> to vector<2x256xf32>
    %180 = vector.broadcast %178 : f32 to vector<2x256xf32>
    %181 = arith.mulf %180, %179 : vector<2x256xf32>
    %182 = arith.addf %175, %181 : vector<2x256xf32>
    %c9 = arith.constant 9 : index
    %183 = memref.load %arg1[%c9] : memref<98xf32, #tpu.memory_space<smem>>
    %184 = vector.extract_strided_slice %177 {offsets = [0, 18], sizes = [2, 256], strides = [1, 1]} : vector<2x358xf32> to vector<2x256xf32>
    %185 = vector.broadcast %183 : f32 to vector<2x256xf32>
    %186 = arith.mulf %185, %184 : vector<2x256xf32>
    %187 = arith.addf %182, %186 : vector<2x256xf32>
    %c16 = arith.constant 16 : index
    %188 = memref.load %arg1[%c16] : memref<98xf32, #tpu.memory_space<smem>>
    %189 = vector.extract_strided_slice %177 {offsets = [0, 34], sizes = [2, 256], strides = [1, 1]} : vector<2x358xf32> to vector<2x256xf32>
    %190 = vector.broadcast %188 : f32 to vector<2x256xf32>
    %191 = arith.mulf %190, %189 : vector<2x256xf32>
    %192 = arith.addf %187, %191 : vector<2x256xf32>
    %c23 = arith.constant 23 : index
    %193 = memref.load %arg1[%c23] : memref<98xf32, #tpu.memory_space<smem>>
    %194 = vector.extract_strided_slice %177 {offsets = [0, 50], sizes = [2, 256], strides = [1, 1]} : vector<2x358xf32> to vector<2x256xf32>
    %195 = vector.broadcast %193 : f32 to vector<2x256xf32>
    %196 = arith.mulf %195, %194 : vector<2x256xf32>
    %197 = arith.addf %192, %196 : vector<2x256xf32>
    %c30 = arith.constant 30 : index
    %198 = memref.load %arg1[%c30] : memref<98xf32, #tpu.memory_space<smem>>
    %199 = vector.extract_strided_slice %177 {offsets = [0, 66], sizes = [2, 256], strides = [1, 1]} : vector<2x358xf32> to vector<2x256xf32>
    %200 = vector.broadcast %198 : f32 to vector<2x256xf32>
    %201 = arith.mulf %200, %199 : vector<2x256xf32>
    %202 = arith.addf %197, %201 : vector<2x256xf32>
    %c37 = arith.constant 37 : index
    %203 = memref.load %arg1[%c37] : memref<98xf32, #tpu.memory_space<smem>>
    %204 = vector.extract_strided_slice %177 {offsets = [0, 82], sizes = [2, 256], strides = [1, 1]} : vector<2x358xf32> to vector<2x256xf32>
    %205 = vector.broadcast %203 : f32 to vector<2x256xf32>
    %206 = arith.mulf %205, %204 : vector<2x256xf32>
    %207 = arith.addf %202, %206 : vector<2x256xf32>
    %c44 = arith.constant 44 : index
    %208 = memref.load %arg1[%c44] : memref<98xf32, #tpu.memory_space<smem>>
    %209 = vector.extract_strided_slice %177 {offsets = [0, 98], sizes = [2, 256], strides = [1, 1]} : vector<2x358xf32> to vector<2x256xf32>
    %210 = vector.broadcast %208 : f32 to vector<2x256xf32>
    %211 = arith.mulf %210, %209 : vector<2x256xf32>
    %212 = arith.addf %207, %211 : vector<2x256xf32>
    %213 = vector.extract_strided_slice %15 {offsets = [1, 0, 0], sizes = [1, 2, 358], strides = [1, 1, 1]} : vector<2x2x358xf32> to vector<1x2x358xf32>
    %214 = vector.shape_cast %213 : vector<1x2x358xf32> to vector<2x358xf32>
    %c51_28 = arith.constant 51 : index
    %215 = memref.load %arg1[%c51_28] : memref<98xf32, #tpu.memory_space<smem>>
    %216 = vector.extract_strided_slice %214 {offsets = [0, 2], sizes = [2, 256], strides = [1, 1]} : vector<2x358xf32> to vector<2x256xf32>
    %217 = vector.broadcast %215 : f32 to vector<2x256xf32>
    %218 = arith.mulf %217, %216 : vector<2x256xf32>
    %219 = arith.addf %212, %218 : vector<2x256xf32>
    %c58 = arith.constant 58 : index
    %220 = memref.load %arg1[%c58] : memref<98xf32, #tpu.memory_space<smem>>
    %221 = vector.extract_strided_slice %214 {offsets = [0, 18], sizes = [2, 256], strides = [1, 1]} : vector<2x358xf32> to vector<2x256xf32>
    %222 = vector.broadcast %220 : f32 to vector<2x256xf32>
    %223 = arith.mulf %222, %221 : vector<2x256xf32>
    %224 = arith.addf %219, %223 : vector<2x256xf32>
    %c65 = arith.constant 65 : index
    %225 = memref.load %arg1[%c65] : memref<98xf32, #tpu.memory_space<smem>>
    %226 = vector.extract_strided_slice %214 {offsets = [0, 34], sizes = [2, 256], strides = [1, 1]} : vector<2x358xf32> to vector<2x256xf32>
    %227 = vector.broadcast %225 : f32 to vector<2x256xf32>
    %228 = arith.mulf %227, %226 : vector<2x256xf32>
    %229 = arith.addf %224, %228 : vector<2x256xf32>
    %c72 = arith.constant 72 : index
    %230 = memref.load %arg1[%c72] : memref<98xf32, #tpu.memory_space<smem>>
    %231 = vector.extract_strided_slice %214 {offsets = [0, 50], sizes = [2, 256], strides = [1, 1]} : vector<2x358xf32> to vector<2x256xf32>
    %232 = vector.broadcast %230 : f32 to vector<2x256xf32>
    %233 = arith.mulf %232, %231 : vector<2x256xf32>
    %234 = arith.addf %229, %233 : vector<2x256xf32>
    %c79 = arith.constant 79 : index
    %235 = memref.load %arg1[%c79] : memref<98xf32, #tpu.memory_space<smem>>
    %236 = vector.extract_strided_slice %214 {offsets = [0, 66], sizes = [2, 256], strides = [1, 1]} : vector<2x358xf32> to vector<2x256xf32>
    %237 = vector.broadcast %235 : f32 to vector<2x256xf32>
    %238 = arith.mulf %237, %236 : vector<2x256xf32>
    %239 = arith.addf %234, %238 : vector<2x256xf32>
    %c86 = arith.constant 86 : index
    %240 = memref.load %arg1[%c86] : memref<98xf32, #tpu.memory_space<smem>>
    %241 = vector.extract_strided_slice %214 {offsets = [0, 82], sizes = [2, 256], strides = [1, 1]} : vector<2x358xf32> to vector<2x256xf32>
    %242 = vector.broadcast %240 : f32 to vector<2x256xf32>
    %243 = arith.mulf %242, %241 : vector<2x256xf32>
    %244 = arith.addf %239, %243 : vector<2x256xf32>
    %c93 = arith.constant 93 : index
    %245 = memref.load %arg1[%c93] : memref<98xf32, #tpu.memory_space<smem>>
    %246 = vector.extract_strided_slice %214 {offsets = [0, 98], sizes = [2, 256], strides = [1, 1]} : vector<2x358xf32> to vector<2x256xf32>
    %247 = vector.broadcast %245 : f32 to vector<2x256xf32>
    %248 = arith.mulf %247, %246 : vector<2x256xf32>
    %249 = arith.addf %244, %248 : vector<2x256xf32>
    %c2_29 = arith.constant 2 : index
    %c0_30 = arith.constant 0 : index
    %250 = vector.load %arg4[%c2_29, %c0_30] : memref<7x256xf32, #tpu.memory_space<vmem>>, vector<1x256xf32>
    %251 = vector.broadcast %250 : vector<1x256xf32> to vector<2x256xf32>
    %252 = arith.mulf %249, %251 : vector<2x256xf32>
    %253 = arith.addf %174, %252 : vector<2x256xf32>
    %cst_31 = arith.constant 0.000000e+00 : f32
    %254 = vector.broadcast %cst_31 : f32 to vector<2x256xf32>
    %255 = vector.extract_strided_slice %15 {offsets = [0, 0, 0], sizes = [1, 2, 358], strides = [1, 1, 1]} : vector<2x2x358xf32> to vector<1x2x358xf32>
    %256 = vector.shape_cast %255 : vector<1x2x358xf32> to vector<2x358xf32>
    %c3 = arith.constant 3 : index
    %257 = memref.load %arg1[%c3] : memref<98xf32, #tpu.memory_space<smem>>
    %258 = vector.extract_strided_slice %256 {offsets = [0, 3], sizes = [2, 256], strides = [1, 1]} : vector<2x358xf32> to vector<2x256xf32>
    %259 = vector.broadcast %257 : f32 to vector<2x256xf32>
    %260 = arith.mulf %259, %258 : vector<2x256xf32>
    %261 = arith.addf %254, %260 : vector<2x256xf32>
    %c10 = arith.constant 10 : index
    %262 = memref.load %arg1[%c10] : memref<98xf32, #tpu.memory_space<smem>>
    %263 = vector.extract_strided_slice %256 {offsets = [0, 19], sizes = [2, 256], strides = [1, 1]} : vector<2x358xf32> to vector<2x256xf32>
    %264 = vector.broadcast %262 : f32 to vector<2x256xf32>
    %265 = arith.mulf %264, %263 : vector<2x256xf32>
    %266 = arith.addf %261, %265 : vector<2x256xf32>
    %c17 = arith.constant 17 : index
    %267 = memref.load %arg1[%c17] : memref<98xf32, #tpu.memory_space<smem>>
    %268 = vector.extract_strided_slice %256 {offsets = [0, 35], sizes = [2, 256], strides = [1, 1]} : vector<2x358xf32> to vector<2x256xf32>
    %269 = vector.broadcast %267 : f32 to vector<2x256xf32>
    %270 = arith.mulf %269, %268 : vector<2x256xf32>
    %271 = arith.addf %266, %270 : vector<2x256xf32>
    %c24 = arith.constant 24 : index
    %272 = memref.load %arg1[%c24] : memref<98xf32, #tpu.memory_space<smem>>
    %273 = vector.extract_strided_slice %256 {offsets = [0, 51], sizes = [2, 256], strides = [1, 1]} : vector<2x358xf32> to vector<2x256xf32>
    %274 = vector.broadcast %272 : f32 to vector<2x256xf32>
    %275 = arith.mulf %274, %273 : vector<2x256xf32>
    %276 = arith.addf %271, %275 : vector<2x256xf32>
    %c31 = arith.constant 31 : index
    %277 = memref.load %arg1[%c31] : memref<98xf32, #tpu.memory_space<smem>>
    %278 = vector.extract_strided_slice %256 {offsets = [0, 67], sizes = [2, 256], strides = [1, 1]} : vector<2x358xf32> to vector<2x256xf32>
    %279 = vector.broadcast %277 : f32 to vector<2x256xf32>
    %280 = arith.mulf %279, %278 : vector<2x256xf32>
    %281 = arith.addf %276, %280 : vector<2x256xf32>
    %c38 = arith.constant 38 : index
    %282 = memref.load %arg1[%c38] : memref<98xf32, #tpu.memory_space<smem>>
    %283 = vector.extract_strided_slice %256 {offsets = [0, 83], sizes = [2, 256], strides = [1, 1]} : vector<2x358xf32> to vector<2x256xf32>
    %284 = vector.broadcast %282 : f32 to vector<2x256xf32>
    %285 = arith.mulf %284, %283 : vector<2x256xf32>
    %286 = arith.addf %281, %285 : vector<2x256xf32>
    %c45 = arith.constant 45 : index
    %287 = memref.load %arg1[%c45] : memref<98xf32, #tpu.memory_space<smem>>
    %288 = vector.extract_strided_slice %256 {offsets = [0, 99], sizes = [2, 256], strides = [1, 1]} : vector<2x358xf32> to vector<2x256xf32>
    %289 = vector.broadcast %287 : f32 to vector<2x256xf32>
    %290 = arith.mulf %289, %288 : vector<2x256xf32>
    %291 = arith.addf %286, %290 : vector<2x256xf32>
    %292 = vector.extract_strided_slice %15 {offsets = [1, 0, 0], sizes = [1, 2, 358], strides = [1, 1, 1]} : vector<2x2x358xf32> to vector<1x2x358xf32>
    %293 = vector.shape_cast %292 : vector<1x2x358xf32> to vector<2x358xf32>
    %c52 = arith.constant 52 : index
    %294 = memref.load %arg1[%c52] : memref<98xf32, #tpu.memory_space<smem>>
    %295 = vector.extract_strided_slice %293 {offsets = [0, 3], sizes = [2, 256], strides = [1, 1]} : vector<2x358xf32> to vector<2x256xf32>
    %296 = vector.broadcast %294 : f32 to vector<2x256xf32>
    %297 = arith.mulf %296, %295 : vector<2x256xf32>
    %298 = arith.addf %291, %297 : vector<2x256xf32>
    %c59 = arith.constant 59 : index
    %299 = memref.load %arg1[%c59] : memref<98xf32, #tpu.memory_space<smem>>
    %300 = vector.extract_strided_slice %293 {offsets = [0, 19], sizes = [2, 256], strides = [1, 1]} : vector<2x358xf32> to vector<2x256xf32>
    %301 = vector.broadcast %299 : f32 to vector<2x256xf32>
    %302 = arith.mulf %301, %300 : vector<2x256xf32>
    %303 = arith.addf %298, %302 : vector<2x256xf32>
    %c66 = arith.constant 66 : index
    %304 = memref.load %arg1[%c66] : memref<98xf32, #tpu.memory_space<smem>>
    %305 = vector.extract_strided_slice %293 {offsets = [0, 35], sizes = [2, 256], strides = [1, 1]} : vector<2x358xf32> to vector<2x256xf32>
    %306 = vector.broadcast %304 : f32 to vector<2x256xf32>
    %307 = arith.mulf %306, %305 : vector<2x256xf32>
    %308 = arith.addf %303, %307 : vector<2x256xf32>
    %c73 = arith.constant 73 : index
    %309 = memref.load %arg1[%c73] : memref<98xf32, #tpu.memory_space<smem>>
    %310 = vector.extract_strided_slice %293 {offsets = [0, 51], sizes = [2, 256], strides = [1, 1]} : vector<2x358xf32> to vector<2x256xf32>
    %311 = vector.broadcast %309 : f32 to vector<2x256xf32>
    %312 = arith.mulf %311, %310 : vector<2x256xf32>
    %313 = arith.addf %308, %312 : vector<2x256xf32>
    %c80 = arith.constant 80 : index
    %314 = memref.load %arg1[%c80] : memref<98xf32, #tpu.memory_space<smem>>
    %315 = vector.extract_strided_slice %293 {offsets = [0, 67], sizes = [2, 256], strides = [1, 1]} : vector<2x358xf32> to vector<2x256xf32>
    %316 = vector.broadcast %314 : f32 to vector<2x256xf32>
    %317 = arith.mulf %316, %315 : vector<2x256xf32>
    %318 = arith.addf %313, %317 : vector<2x256xf32>
    %c87 = arith.constant 87 : index
    %319 = memref.load %arg1[%c87] : memref<98xf32, #tpu.memory_space<smem>>
    %320 = vector.extract_strided_slice %293 {offsets = [0, 83], sizes = [2, 256], strides = [1, 1]} : vector<2x358xf32> to vector<2x256xf32>
    %321 = vector.broadcast %319 : f32 to vector<2x256xf32>
    %322 = arith.mulf %321, %320 : vector<2x256xf32>
    %323 = arith.addf %318, %322 : vector<2x256xf32>
    %c94 = arith.constant 94 : index
    %324 = memref.load %arg1[%c94] : memref<98xf32, #tpu.memory_space<smem>>
    %325 = vector.extract_strided_slice %293 {offsets = [0, 99], sizes = [2, 256], strides = [1, 1]} : vector<2x358xf32> to vector<2x256xf32>
    %326 = vector.broadcast %324 : f32 to vector<2x256xf32>
    %327 = arith.mulf %326, %325 : vector<2x256xf32>
    %328 = arith.addf %323, %327 : vector<2x256xf32>
    %c3_32 = arith.constant 3 : index
    %c0_33 = arith.constant 0 : index
    %329 = vector.load %arg4[%c3_32, %c0_33] : memref<7x256xf32, #tpu.memory_space<vmem>>, vector<1x256xf32>
    %330 = vector.broadcast %329 : vector<1x256xf32> to vector<2x256xf32>
    %331 = arith.mulf %328, %330 : vector<2x256xf32>
    %332 = arith.addf %253, %331 : vector<2x256xf32>
    %cst_34 = arith.constant 0.000000e+00 : f32
    %333 = vector.broadcast %cst_34 : f32 to vector<2x256xf32>
    %334 = vector.extract_strided_slice %15 {offsets = [0, 0, 0], sizes = [1, 2, 358], strides = [1, 1, 1]} : vector<2x2x358xf32> to vector<1x2x358xf32>
    %335 = vector.shape_cast %334 : vector<1x2x358xf32> to vector<2x358xf32>
    %c4 = arith.constant 4 : index
    %336 = memref.load %arg1[%c4] : memref<98xf32, #tpu.memory_space<smem>>
    %337 = vector.extract_strided_slice %335 {offsets = [0, 4], sizes = [2, 256], strides = [1, 1]} : vector<2x358xf32> to vector<2x256xf32>
    %338 = vector.broadcast %336 : f32 to vector<2x256xf32>
    %339 = arith.mulf %338, %337 : vector<2x256xf32>
    %340 = arith.addf %333, %339 : vector<2x256xf32>
    %c11 = arith.constant 11 : index
    %341 = memref.load %arg1[%c11] : memref<98xf32, #tpu.memory_space<smem>>
    %342 = vector.extract_strided_slice %335 {offsets = [0, 20], sizes = [2, 256], strides = [1, 1]} : vector<2x358xf32> to vector<2x256xf32>
    %343 = vector.broadcast %341 : f32 to vector<2x256xf32>
    %344 = arith.mulf %343, %342 : vector<2x256xf32>
    %345 = arith.addf %340, %344 : vector<2x256xf32>
    %c18 = arith.constant 18 : index
    %346 = memref.load %arg1[%c18] : memref<98xf32, #tpu.memory_space<smem>>
    %347 = vector.extract_strided_slice %335 {offsets = [0, 36], sizes = [2, 256], strides = [1, 1]} : vector<2x358xf32> to vector<2x256xf32>
    %348 = vector.broadcast %346 : f32 to vector<2x256xf32>
    %349 = arith.mulf %348, %347 : vector<2x256xf32>
    %350 = arith.addf %345, %349 : vector<2x256xf32>
    %c25 = arith.constant 25 : index
    %351 = memref.load %arg1[%c25] : memref<98xf32, #tpu.memory_space<smem>>
    %352 = vector.extract_strided_slice %335 {offsets = [0, 52], sizes = [2, 256], strides = [1, 1]} : vector<2x358xf32> to vector<2x256xf32>
    %353 = vector.broadcast %351 : f32 to vector<2x256xf32>
    %354 = arith.mulf %353, %352 : vector<2x256xf32>
    %355 = arith.addf %350, %354 : vector<2x256xf32>
    %c32 = arith.constant 32 : index
    %356 = memref.load %arg1[%c32] : memref<98xf32, #tpu.memory_space<smem>>
    %357 = vector.extract_strided_slice %335 {offsets = [0, 68], sizes = [2, 256], strides = [1, 1]} : vector<2x358xf32> to vector<2x256xf32>
    %358 = vector.broadcast %356 : f32 to vector<2x256xf32>
    %359 = arith.mulf %358, %357 : vector<2x256xf32>
    %360 = arith.addf %355, %359 : vector<2x256xf32>
    %c39 = arith.constant 39 : index
    %361 = memref.load %arg1[%c39] : memref<98xf32, #tpu.memory_space<smem>>
    %362 = vector.extract_strided_slice %335 {offsets = [0, 84], sizes = [2, 256], strides = [1, 1]} : vector<2x358xf32> to vector<2x256xf32>
    %363 = vector.broadcast %361 : f32 to vector<2x256xf32>
    %364 = arith.mulf %363, %362 : vector<2x256xf32>
    %365 = arith.addf %360, %364 : vector<2x256xf32>
    %c46 = arith.constant 46 : index
    %366 = memref.load %arg1[%c46] : memref<98xf32, #tpu.memory_space<smem>>
    %367 = vector.extract_strided_slice %335 {offsets = [0, 100], sizes = [2, 256], strides = [1, 1]} : vector<2x358xf32> to vector<2x256xf32>
    %368 = vector.broadcast %366 : f32 to vector<2x256xf32>
    %369 = arith.mulf %368, %367 : vector<2x256xf32>
    %370 = arith.addf %365, %369 : vector<2x256xf32>
    %371 = vector.extract_strided_slice %15 {offsets = [1, 0, 0], sizes = [1, 2, 358], strides = [1, 1, 1]} : vector<2x2x358xf32> to vector<1x2x358xf32>
    %372 = vector.shape_cast %371 : vector<1x2x358xf32> to vector<2x358xf32>
    %c53 = arith.constant 53 : index
    %373 = memref.load %arg1[%c53] : memref<98xf32, #tpu.memory_space<smem>>
    %374 = vector.extract_strided_slice %372 {offsets = [0, 4], sizes = [2, 256], strides = [1, 1]} : vector<2x358xf32> to vector<2x256xf32>
    %375 = vector.broadcast %373 : f32 to vector<2x256xf32>
    %376 = arith.mulf %375, %374 : vector<2x256xf32>
    %377 = arith.addf %370, %376 : vector<2x256xf32>
    %c60 = arith.constant 60 : index
    %378 = memref.load %arg1[%c60] : memref<98xf32, #tpu.memory_space<smem>>
    %379 = vector.extract_strided_slice %372 {offsets = [0, 20], sizes = [2, 256], strides = [1, 1]} : vector<2x358xf32> to vector<2x256xf32>
    %380 = vector.broadcast %378 : f32 to vector<2x256xf32>
    %381 = arith.mulf %380, %379 : vector<2x256xf32>
    %382 = arith.addf %377, %381 : vector<2x256xf32>
    %c67 = arith.constant 67 : index
    %383 = memref.load %arg1[%c67] : memref<98xf32, #tpu.memory_space<smem>>
    %384 = vector.extract_strided_slice %372 {offsets = [0, 36], sizes = [2, 256], strides = [1, 1]} : vector<2x358xf32> to vector<2x256xf32>
    %385 = vector.broadcast %383 : f32 to vector<2x256xf32>
    %386 = arith.mulf %385, %384 : vector<2x256xf32>
    %387 = arith.addf %382, %386 : vector<2x256xf32>
    %c74 = arith.constant 74 : index
    %388 = memref.load %arg1[%c74] : memref<98xf32, #tpu.memory_space<smem>>
    %389 = vector.extract_strided_slice %372 {offsets = [0, 52], sizes = [2, 256], strides = [1, 1]} : vector<2x358xf32> to vector<2x256xf32>
    %390 = vector.broadcast %388 : f32 to vector<2x256xf32>
    %391 = arith.mulf %390, %389 : vector<2x256xf32>
    %392 = arith.addf %387, %391 : vector<2x256xf32>
    %c81 = arith.constant 81 : index
    %393 = memref.load %arg1[%c81] : memref<98xf32, #tpu.memory_space<smem>>
    %394 = vector.extract_strided_slice %372 {offsets = [0, 68], sizes = [2, 256], strides = [1, 1]} : vector<2x358xf32> to vector<2x256xf32>
    %395 = vector.broadcast %393 : f32 to vector<2x256xf32>
    %396 = arith.mulf %395, %394 : vector<2x256xf32>
    %397 = arith.addf %392, %396 : vector<2x256xf32>
    %c88 = arith.constant 88 : index
    %398 = memref.load %arg1[%c88] : memref<98xf32, #tpu.memory_space<smem>>
    %399 = vector.extract_strided_slice %372 {offsets = [0, 84], sizes = [2, 256], strides = [1, 1]} : vector<2x358xf32> to vector<2x256xf32>
    %400 = vector.broadcast %398 : f32 to vector<2x256xf32>
    %401 = arith.mulf %400, %399 : vector<2x256xf32>
    %402 = arith.addf %397, %401 : vector<2x256xf32>
    %c95 = arith.constant 95 : index
    %403 = memref.load %arg1[%c95] : memref<98xf32, #tpu.memory_space<smem>>
    %404 = vector.extract_strided_slice %372 {offsets = [0, 100], sizes = [2, 256], strides = [1, 1]} : vector<2x358xf32> to vector<2x256xf32>
    %405 = vector.broadcast %403 : f32 to vector<2x256xf32>
    %406 = arith.mulf %405, %404 : vector<2x256xf32>
    %407 = arith.addf %402, %406 : vector<2x256xf32>
    %c4_35 = arith.constant 4 : index
    %c0_36 = arith.constant 0 : index
    %408 = vector.load %arg4[%c4_35, %c0_36] : memref<7x256xf32, #tpu.memory_space<vmem>>, vector<1x256xf32>
    %409 = vector.broadcast %408 : vector<1x256xf32> to vector<2x256xf32>
    %410 = arith.mulf %407, %409 : vector<2x256xf32>
    %411 = arith.addf %332, %410 : vector<2x256xf32>
    %cst_37 = arith.constant 0.000000e+00 : f32
    %412 = vector.broadcast %cst_37 : f32 to vector<2x256xf32>
    %413 = vector.extract_strided_slice %15 {offsets = [0, 0, 0], sizes = [1, 2, 358], strides = [1, 1, 1]} : vector<2x2x358xf32> to vector<1x2x358xf32>
    %414 = vector.shape_cast %413 : vector<1x2x358xf32> to vector<2x358xf32>
    %c5 = arith.constant 5 : index
    %415 = memref.load %arg1[%c5] : memref<98xf32, #tpu.memory_space<smem>>
    %416 = vector.extract_strided_slice %414 {offsets = [0, 5], sizes = [2, 256], strides = [1, 1]} : vector<2x358xf32> to vector<2x256xf32>
    %417 = vector.broadcast %415 : f32 to vector<2x256xf32>
    %418 = arith.mulf %417, %416 : vector<2x256xf32>
    %419 = arith.addf %412, %418 : vector<2x256xf32>
    %c12 = arith.constant 12 : index
    %420 = memref.load %arg1[%c12] : memref<98xf32, #tpu.memory_space<smem>>
    %421 = vector.extract_strided_slice %414 {offsets = [0, 21], sizes = [2, 256], strides = [1, 1]} : vector<2x358xf32> to vector<2x256xf32>
    %422 = vector.broadcast %420 : f32 to vector<2x256xf32>
    %423 = arith.mulf %422, %421 : vector<2x256xf32>
    %424 = arith.addf %419, %423 : vector<2x256xf32>
    %c19 = arith.constant 19 : index
    %425 = memref.load %arg1[%c19] : memref<98xf32, #tpu.memory_space<smem>>
    %426 = vector.extract_strided_slice %414 {offsets = [0, 37], sizes = [2, 256], strides = [1, 1]} : vector<2x358xf32> to vector<2x256xf32>
    %427 = vector.broadcast %425 : f32 to vector<2x256xf32>
    %428 = arith.mulf %427, %426 : vector<2x256xf32>
    %429 = arith.addf %424, %428 : vector<2x256xf32>
    %c26 = arith.constant 26 : index
    %430 = memref.load %arg1[%c26] : memref<98xf32, #tpu.memory_space<smem>>
    %431 = vector.extract_strided_slice %414 {offsets = [0, 53], sizes = [2, 256], strides = [1, 1]} : vector<2x358xf32> to vector<2x256xf32>
    %432 = vector.broadcast %430 : f32 to vector<2x256xf32>
    %433 = arith.mulf %432, %431 : vector<2x256xf32>
    %434 = arith.addf %429, %433 : vector<2x256xf32>
    %c33 = arith.constant 33 : index
    %435 = memref.load %arg1[%c33] : memref<98xf32, #tpu.memory_space<smem>>
    %436 = vector.extract_strided_slice %414 {offsets = [0, 69], sizes = [2, 256], strides = [1, 1]} : vector<2x358xf32> to vector<2x256xf32>
    %437 = vector.broadcast %435 : f32 to vector<2x256xf32>
    %438 = arith.mulf %437, %436 : vector<2x256xf32>
    %439 = arith.addf %434, %438 : vector<2x256xf32>
    %c40 = arith.constant 40 : index
    %440 = memref.load %arg1[%c40] : memref<98xf32, #tpu.memory_space<smem>>
    %441 = vector.extract_strided_slice %414 {offsets = [0, 85], sizes = [2, 256], strides = [1, 1]} : vector<2x358xf32> to vector<2x256xf32>
    %442 = vector.broadcast %440 : f32 to vector<2x256xf32>
    %443 = arith.mulf %442, %441 : vector<2x256xf32>
    %444 = arith.addf %439, %443 : vector<2x256xf32>
    %c47 = arith.constant 47 : index
    %445 = memref.load %arg1[%c47] : memref<98xf32, #tpu.memory_space<smem>>
    %446 = vector.extract_strided_slice %414 {offsets = [0, 101], sizes = [2, 256], strides = [1, 1]} : vector<2x358xf32> to vector<2x256xf32>
    %447 = vector.broadcast %445 : f32 to vector<2x256xf32>
    %448 = arith.mulf %447, %446 : vector<2x256xf32>
    %449 = arith.addf %444, %448 : vector<2x256xf32>
    %450 = vector.extract_strided_slice %15 {offsets = [1, 0, 0], sizes = [1, 2, 358], strides = [1, 1, 1]} : vector<2x2x358xf32> to vector<1x2x358xf32>
    %451 = vector.shape_cast %450 : vector<1x2x358xf32> to vector<2x358xf32>
    %c54 = arith.constant 54 : index
    %452 = memref.load %arg1[%c54] : memref<98xf32, #tpu.memory_space<smem>>
    %453 = vector.extract_strided_slice %451 {offsets = [0, 5], sizes = [2, 256], strides = [1, 1]} : vector<2x358xf32> to vector<2x256xf32>
    %454 = vector.broadcast %452 : f32 to vector<2x256xf32>
    %455 = arith.mulf %454, %453 : vector<2x256xf32>
    %456 = arith.addf %449, %455 : vector<2x256xf32>
    %c61 = arith.constant 61 : index
    %457 = memref.load %arg1[%c61] : memref<98xf32, #tpu.memory_space<smem>>
    %458 = vector.extract_strided_slice %451 {offsets = [0, 21], sizes = [2, 256], strides = [1, 1]} : vector<2x358xf32> to vector<2x256xf32>
    %459 = vector.broadcast %457 : f32 to vector<2x256xf32>
    %460 = arith.mulf %459, %458 : vector<2x256xf32>
    %461 = arith.addf %456, %460 : vector<2x256xf32>
    %c68 = arith.constant 68 : index
    %462 = memref.load %arg1[%c68] : memref<98xf32, #tpu.memory_space<smem>>
    %463 = vector.extract_strided_slice %451 {offsets = [0, 37], sizes = [2, 256], strides = [1, 1]} : vector<2x358xf32> to vector<2x256xf32>
    %464 = vector.broadcast %462 : f32 to vector<2x256xf32>
    %465 = arith.mulf %464, %463 : vector<2x256xf32>
    %466 = arith.addf %461, %465 : vector<2x256xf32>
    %c75 = arith.constant 75 : index
    %467 = memref.load %arg1[%c75] : memref<98xf32, #tpu.memory_space<smem>>
    %468 = vector.extract_strided_slice %451 {offsets = [0, 53], sizes = [2, 256], strides = [1, 1]} : vector<2x358xf32> to vector<2x256xf32>
    %469 = vector.broadcast %467 : f32 to vector<2x256xf32>
    %470 = arith.mulf %469, %468 : vector<2x256xf32>
    %471 = arith.addf %466, %470 : vector<2x256xf32>
    %c82 = arith.constant 82 : index
    %472 = memref.load %arg1[%c82] : memref<98xf32, #tpu.memory_space<smem>>
    %473 = vector.extract_strided_slice %451 {offsets = [0, 69], sizes = [2, 256], strides = [1, 1]} : vector<2x358xf32> to vector<2x256xf32>
    %474 = vector.broadcast %472 : f32 to vector<2x256xf32>
    %475 = arith.mulf %474, %473 : vector<2x256xf32>
    %476 = arith.addf %471, %475 : vector<2x256xf32>
    %c89 = arith.constant 89 : index
    %477 = memref.load %arg1[%c89] : memref<98xf32, #tpu.memory_space<smem>>
    %478 = vector.extract_strided_slice %451 {offsets = [0, 85], sizes = [2, 256], strides = [1, 1]} : vector<2x358xf32> to vector<2x256xf32>
    %479 = vector.broadcast %477 : f32 to vector<2x256xf32>
    %480 = arith.mulf %479, %478 : vector<2x256xf32>
    %481 = arith.addf %476, %480 : vector<2x256xf32>
    %c96 = arith.constant 96 : index
    %482 = memref.load %arg1[%c96] : memref<98xf32, #tpu.memory_space<smem>>
    %483 = vector.extract_strided_slice %451 {offsets = [0, 101], sizes = [2, 256], strides = [1, 1]} : vector<2x358xf32> to vector<2x256xf32>
    %484 = vector.broadcast %482 : f32 to vector<2x256xf32>
    %485 = arith.mulf %484, %483 : vector<2x256xf32>
    %486 = arith.addf %481, %485 : vector<2x256xf32>
    %c5_38 = arith.constant 5 : index
    %c0_39 = arith.constant 0 : index
    %487 = vector.load %arg4[%c5_38, %c0_39] : memref<7x256xf32, #tpu.memory_space<vmem>>, vector<1x256xf32>
    %488 = vector.broadcast %487 : vector<1x256xf32> to vector<2x256xf32>
    %489 = arith.mulf %486, %488 : vector<2x256xf32>
    %490 = arith.addf %411, %489 : vector<2x256xf32>
    %cst_40 = arith.constant 0.000000e+00 : f32
    %491 = vector.broadcast %cst_40 : f32 to vector<2x256xf32>
    %492 = vector.extract_strided_slice %15 {offsets = [0, 0, 0], sizes = [1, 2, 358], strides = [1, 1, 1]} : vector<2x2x358xf32> to vector<1x2x358xf32>
    %493 = vector.shape_cast %492 : vector<1x2x358xf32> to vector<2x358xf32>
    %c6 = arith.constant 6 : index
    %494 = memref.load %arg1[%c6] : memref<98xf32, #tpu.memory_space<smem>>
    %495 = vector.extract_strided_slice %493 {offsets = [0, 6], sizes = [2, 256], strides = [1, 1]} : vector<2x358xf32> to vector<2x256xf32>
    %496 = vector.broadcast %494 : f32 to vector<2x256xf32>
    %497 = arith.mulf %496, %495 : vector<2x256xf32>
    %498 = arith.addf %491, %497 : vector<2x256xf32>
    %c13 = arith.constant 13 : index
    %499 = memref.load %arg1[%c13] : memref<98xf32, #tpu.memory_space<smem>>
    %500 = vector.extract_strided_slice %493 {offsets = [0, 22], sizes = [2, 256], strides = [1, 1]} : vector<2x358xf32> to vector<2x256xf32>
    %501 = vector.broadcast %499 : f32 to vector<2x256xf32>
    %502 = arith.mulf %501, %500 : vector<2x256xf32>
    %503 = arith.addf %498, %502 : vector<2x256xf32>
    %c20 = arith.constant 20 : index
    %504 = memref.load %arg1[%c20] : memref<98xf32, #tpu.memory_space<smem>>
    %505 = vector.extract_strided_slice %493 {offsets = [0, 38], sizes = [2, 256], strides = [1, 1]} : vector<2x358xf32> to vector<2x256xf32>
    %506 = vector.broadcast %504 : f32 to vector<2x256xf32>
    %507 = arith.mulf %506, %505 : vector<2x256xf32>
    %508 = arith.addf %503, %507 : vector<2x256xf32>
    %c27 = arith.constant 27 : index
    %509 = memref.load %arg1[%c27] : memref<98xf32, #tpu.memory_space<smem>>
    %510 = vector.extract_strided_slice %493 {offsets = [0, 54], sizes = [2, 256], strides = [1, 1]} : vector<2x358xf32> to vector<2x256xf32>
    %511 = vector.broadcast %509 : f32 to vector<2x256xf32>
    %512 = arith.mulf %511, %510 : vector<2x256xf32>
    %513 = arith.addf %508, %512 : vector<2x256xf32>
    %c34 = arith.constant 34 : index
    %514 = memref.load %arg1[%c34] : memref<98xf32, #tpu.memory_space<smem>>
    %515 = vector.extract_strided_slice %493 {offsets = [0, 70], sizes = [2, 256], strides = [1, 1]} : vector<2x358xf32> to vector<2x256xf32>
    %516 = vector.broadcast %514 : f32 to vector<2x256xf32>
    %517 = arith.mulf %516, %515 : vector<2x256xf32>
    %518 = arith.addf %513, %517 : vector<2x256xf32>
    %c41 = arith.constant 41 : index
    %519 = memref.load %arg1[%c41] : memref<98xf32, #tpu.memory_space<smem>>
    %520 = vector.extract_strided_slice %493 {offsets = [0, 86], sizes = [2, 256], strides = [1, 1]} : vector<2x358xf32> to vector<2x256xf32>
    %521 = vector.broadcast %519 : f32 to vector<2x256xf32>
    %522 = arith.mulf %521, %520 : vector<2x256xf32>
    %523 = arith.addf %518, %522 : vector<2x256xf32>
    %c48 = arith.constant 48 : index
    %524 = memref.load %arg1[%c48] : memref<98xf32, #tpu.memory_space<smem>>
    %525 = vector.extract_strided_slice %493 {offsets = [0, 102], sizes = [2, 256], strides = [1, 1]} : vector<2x358xf32> to vector<2x256xf32>
    %526 = vector.broadcast %524 : f32 to vector<2x256xf32>
    %527 = arith.mulf %526, %525 : vector<2x256xf32>
    %528 = arith.addf %523, %527 : vector<2x256xf32>
    %529 = vector.extract_strided_slice %15 {offsets = [1, 0, 0], sizes = [1, 2, 358], strides = [1, 1, 1]} : vector<2x2x358xf32> to vector<1x2x358xf32>
    %530 = vector.shape_cast %529 : vector<1x2x358xf32> to vector<2x358xf32>
    %c55 = arith.constant 55 : index
    %531 = memref.load %arg1[%c55] : memref<98xf32, #tpu.memory_space<smem>>
    %532 = vector.extract_strided_slice %530 {offsets = [0, 6], sizes = [2, 256], strides = [1, 1]} : vector<2x358xf32> to vector<2x256xf32>
    %533 = vector.broadcast %531 : f32 to vector<2x256xf32>
    %534 = arith.mulf %533, %532 : vector<2x256xf32>
    %535 = arith.addf %528, %534 : vector<2x256xf32>
    %c62 = arith.constant 62 : index
    %536 = memref.load %arg1[%c62] : memref<98xf32, #tpu.memory_space<smem>>
    %537 = vector.extract_strided_slice %530 {offsets = [0, 22], sizes = [2, 256], strides = [1, 1]} : vector<2x358xf32> to vector<2x256xf32>
    %538 = vector.broadcast %536 : f32 to vector<2x256xf32>
    %539 = arith.mulf %538, %537 : vector<2x256xf32>
    %540 = arith.addf %535, %539 : vector<2x256xf32>
    %c69 = arith.constant 69 : index
    %541 = memref.load %arg1[%c69] : memref<98xf32, #tpu.memory_space<smem>>
    %542 = vector.extract_strided_slice %530 {offsets = [0, 38], sizes = [2, 256], strides = [1, 1]} : vector<2x358xf32> to vector<2x256xf32>
    %543 = vector.broadcast %541 : f32 to vector<2x256xf32>
    %544 = arith.mulf %543, %542 : vector<2x256xf32>
    %545 = arith.addf %540, %544 : vector<2x256xf32>
    %c76 = arith.constant 76 : index
    %546 = memref.load %arg1[%c76] : memref<98xf32, #tpu.memory_space<smem>>
    %547 = vector.extract_strided_slice %530 {offsets = [0, 54], sizes = [2, 256], strides = [1, 1]} : vector<2x358xf32> to vector<2x256xf32>
    %548 = vector.broadcast %546 : f32 to vector<2x256xf32>
    %549 = arith.mulf %548, %547 : vector<2x256xf32>
    %550 = arith.addf %545, %549 : vector<2x256xf32>
    %c83 = arith.constant 83 : index
    %551 = memref.load %arg1[%c83] : memref<98xf32, #tpu.memory_space<smem>>
    %552 = vector.extract_strided_slice %530 {offsets = [0, 70], sizes = [2, 256], strides = [1, 1]} : vector<2x358xf32> to vector<2x256xf32>
    %553 = vector.broadcast %551 : f32 to vector<2x256xf32>
    %554 = arith.mulf %553, %552 : vector<2x256xf32>
    %555 = arith.addf %550, %554 : vector<2x256xf32>
    %c90 = arith.constant 90 : index
    %556 = memref.load %arg1[%c90] : memref<98xf32, #tpu.memory_space<smem>>
    %557 = vector.extract_strided_slice %530 {offsets = [0, 86], sizes = [2, 256], strides = [1, 1]} : vector<2x358xf32> to vector<2x256xf32>
    %558 = vector.broadcast %556 : f32 to vector<2x256xf32>
    %559 = arith.mulf %558, %557 : vector<2x256xf32>
    %560 = arith.addf %555, %559 : vector<2x256xf32>
    %c97 = arith.constant 97 : index
    %561 = memref.load %arg1[%c97] : memref<98xf32, #tpu.memory_space<smem>>
    %562 = vector.extract_strided_slice %530 {offsets = [0, 102], sizes = [2, 256], strides = [1, 1]} : vector<2x358xf32> to vector<2x256xf32>
    %563 = vector.broadcast %561 : f32 to vector<2x256xf32>
    %564 = arith.mulf %563, %562 : vector<2x256xf32>
    %565 = arith.addf %560, %564 : vector<2x256xf32>
    %c6_41 = arith.constant 6 : index
    %c0_42 = arith.constant 0 : index
    %566 = vector.load %arg4[%c6_41, %c0_42] : memref<7x256xf32, #tpu.memory_space<vmem>>, vector<1x256xf32>
    %567 = vector.broadcast %566 : vector<1x256xf32> to vector<2x256xf32>
    %568 = arith.mulf %565, %567 : vector<2x256xf32>
    %569 = arith.addf %490, %568 : vector<2x256xf32>
    %cst_43 = arith.constant 0.000000e+00 : f32
    %570 = vector.broadcast %cst_43 : f32 to vector<2x256xf32>
    %571 = arith.subf %570, %569 : vector<2x256xf32>
    %572 = math.exp %571 : vector<2x256xf32>
    %cst_44 = arith.constant 1.000000e+00 : f32
    %573 = vector.broadcast %cst_44 : f32 to vector<2x256xf32>
    %574 = arith.addf %573, %572 : vector<2x256xf32>
    %cst_45 = arith.constant 1.000000e+00 : f32
    %575 = vector.broadcast %cst_45 : f32 to vector<2x256xf32>
    %576 = arith.divf %575, %574 : vector<2x256xf32>
    %cst_46 = arith.constant dense<0.000000e+00> : vector<2xf32>
    %577 = vector.multi_reduction <add>, %3, %cst_46 [1] : vector<2x256xf32> to vector<2xf32>
    %578 = vector.shape_cast %577 : vector<2xf32> to vector<2x1xf32>
    %cst_47 = arith.constant 2.560000e+02 : f32
    %579 = vector.broadcast %cst_47 : f32 to vector<2x1xf32>
    %580 = arith.divf %578, %579 : vector<2x1xf32>
    %c1_48 = arith.constant 1 : index
    %581 = memref.load %arg2[%c1_48] : memref<3xf32, #tpu.memory_space<smem>>
    %582 = vector.broadcast %581 : f32 to vector<2x1xf32>
    %583 = arith.mulf %582, %580 : vector<2x1xf32>
    %cst_49 = arith.constant 0.000000e+00 : f32
    %584 = vector.broadcast %cst_49 : f32 to vector<2x1xf32>
    %585 = arith.subf %584, %583 : vector<2x1xf32>
    %586 = math.exp %585 : vector<2x1xf32>
    %cst_50 = arith.constant 1.000000e+00 : f32
    %587 = vector.broadcast %cst_50 : f32 to vector<2x1xf32>
    %588 = arith.addf %587, %586 : vector<2x1xf32>
    %cst_51 = arith.constant 1.000000e+00 : f32
    %589 = vector.broadcast %cst_51 : f32 to vector<2x1xf32>
    %590 = arith.divf %589, %588 : vector<2x1xf32>
    %c1_52 = arith.constant 1 : index
    %591 = memref.load %arg3[%c1_52] : memref<3xf32, #tpu.memory_space<smem>>
    %592 = vector.broadcast %591 : f32 to vector<2x1xf32>
    %593 = arith.mulf %592, %580 : vector<2x1xf32>
    %cst_53 = arith.constant 0.000000e+00 : f32
    %594 = vector.broadcast %cst_53 : f32 to vector<2x1xf32>
    %595 = arith.subf %594, %593 : vector<2x1xf32>
    %596 = math.exp %595 : vector<2x1xf32>
    %cst_54 = arith.constant 1.000000e+00 : f32
    %597 = vector.broadcast %cst_54 : f32 to vector<2x1xf32>
    %598 = arith.addf %597, %596 : vector<2x1xf32>
    %cst_55 = arith.constant 1.000000e+00 : f32
    %599 = vector.broadcast %cst_55 : f32 to vector<2x1xf32>
    %600 = arith.divf %599, %598 : vector<2x1xf32>
    %601 = arith.addf %590, %600 : vector<2x1xf32>
    %cst_56 = arith.constant 5.000000e-01 : f32
    %602 = vector.broadcast %cst_56 : f32 to vector<2x1xf32>
    %603 = arith.mulf %602, %601 : vector<2x1xf32>
    %604 = vector.broadcast %603 : vector<2x1xf32> to vector<2x256xf32>
    %605 = arith.mulf %576, %604 : vector<2x256xf32>
    %606 = vector.shape_cast %605 : vector<2x256xf32> to vector<2x1x256xf32>
    %607 = vector.broadcast %606 : vector<2x1x256xf32> to vector<2x4x256xf32>
    %608 = arith.mulf %0, %607 : vector<2x4x256xf32>
    %c0_57 = arith.constant 0 : index
    %c0_58 = arith.constant 0 : index
    %c0_59 = arith.constant 0 : index
    %609 = vector.load %arg6[%c0_57, %c0_58, %c0_59] : memref<2x4x256xf32, #tpu.memory_space<vmem>>, vector<2x4x256xf32>
    tpu.vector_store %arg6[%c0_57, %c0_58, %c0_59], %608 {strides = array<i32>} : memref<2x4x256xf32, #tpu.memory_space<vmem>>, vector<2x4x256xf32>,
    return
  }
  func.func @transform_0(%arg0: i32) -> i32 {
    %c0_i32 = arith.constant 0 : i32
    %c0_i32_0 = arith.constant 0 : i32
    return %c0_i32 : i32
  }
  func.func @transform_1(%arg0: i32) -> i32 {
    %c0_i32 = arith.constant 0 : i32
    %c0_i32_0 = arith.constant 0 : i32
    return %c0_i32 : i32
  }
  func.func @transform_2(%arg0: i32) -> i32 {
    %c0_i32 = arith.constant 0 : i32
    %c0_i32_0 = arith.constant 0 : i32
    return %c0_i32 : i32
  }
  func.func @transform_3(%arg0: i32) -> (i32, i32) {
    %c0_i32 = arith.constant 0 : i32
    %c0_i32_0 = arith.constant 0 : i32
    %c0_i32_1 = arith.constant 0 : i32
    return %c0_i32, %c0_i32_0 : i32, i32
  }
  func.func @transform_4(%arg0: i32) -> (i32, i32, i32) {
    %c0_i32 = arith.constant 0 : i32
    %c0_i32_0 = arith.constant 0 : i32
    %c0_i32_1 = arith.constant 0 : i32
    return %arg0, %c0_i32, %c0_i32_0 : i32, i32, i32
  }
  func.func @transform_5(%arg0: i32) -> (i32, i32, i32) {
    %c0_i32 = arith.constant 0 : i32
    %c0_i32_0 = arith.constant 0 : i32
    %c0_i32_1 = arith.constant 0 : i32
    return %arg0, %c0_i32, %c0_i32_0 : i32, i32, i32
  }
}

</mosaic_0001>

<bundles_post_ra>
// kernel: tpu_custom_call.1
= control target key start
LH: loop header
LB: loop body
LE: loop exit
PB: predicated region body
PF: predicated region fallthrough
CT: control target
= control target key end

     0   :  { %10 = vsyncpa [#allocation6], 0  ;;  %s2494_s0 = inlined_call_operand.hbm [shape: f32[98], index: 0, kind: input, shape index: {}]   ;;  %s2495_s1 = inlined_call_operand.vmem [shape: f32[3], index: 1, kind: input, shape index: {}]   ;;  %s2496_s2 = inlined_call_operand.vmem [shape: f32[3], index: 2, kind: input, shape index: {}]   ;;  %s2497_s3 = inlined_call_operand.hbm [shape: f32[7,256], index: 3, kind: input, shape index: {}]   ;;  %s2498_s4 = inlined_call_operand.hbm [shape: f32[2,4,256], index: 4, kind: input, shape index: {}]   ;;  %s2499_s5 = inlined_call_operand.hbm [shape: f32[2,4,256], index: 5, kind: output, shape index: {}]  }
   0x1   :  { %11 = vsyncpa [#allocation7], 0 }
   0x2   :  { %12 = vsyncpa [#allocation10], 0 }
   0x3   :  { %13 = vsyncpa [#allocation4], 0 }
   0x4   :  { %14 = vsyncpa [#allocation13], 0 }
   0x5   :  { %15 = vsyncpa [#allocation5], 0  ;;  %s30_s20 = sshll.u32 %s2495_s1, 4  ;;  %s1615_s23 = scalar_lea.hbm %s2494_s0, 16  ;;  %s31_s20 = int_to_ptr.vmem [resolvable:$true] %s30_s20 }
   0x6   :  { %p1616_p0 = scmp.ne.s32.totalorder %s2494_s0, %s1615_s23  ;;  %p1619_p1 = scmp.lt.u32.totalorder %s1615_s23, %s2494_s0 }
   0x8   :  { %p1621_p2 = pnand %p1619_p1, %p1616_p0 }
   0xa   :  { %1624 = shalt.err (!%p1621_p2)
}
   0xb   :  { %s1727_s28 = smov [#allocation3]   ;;  %s1625_s1 = scalar_lea.vmem %s31_s20, 16 }
   0xc   :  { %23 = dma.hbm_to_smem %s2494_s0, 16, %s1727_s28, [#allocation6]  }
   0xd   :  { %p1626_p3 = scmp.ne.s32.totalorder %s31_s20, %s1625_s1  ;;  %p1630_p4 = scmp.lt.s32.totalorder %s31_s20, %s31_s20 }
   0xe   :  { %p1631_p5 = scmp.lt.s32.totalorder %s1625_s1, %s1625_s1 }
  0x10   :  { %p1632_p6 = por %p1631_p5, %p1630_p4 }
  0x12   :  { %p1633_p7 = pnand %p1632_p6, %p1626_p3 }
  0x14   :  { %1636 = shalt.err (!%p1633_p7)
}
  0x15   :  { %s1728_s6 = smov [#allocation8]   ;;  %s40_s9 = sshll.u32 %s2496_s2, 4  ;;  %s41_s9 = int_to_ptr.vmem [resolvable:$true] %s40_s9 }
  0x16   :  { %33 = dma.vmem_to_smem %s31_s20, 16, %s1728_s6, [#allocation7]  }
  0x17   :  { %s1637_s10 = scalar_lea.vmem %s41_s9, 16  ;;  %p1642_p9 = scmp.lt.s32.totalorder %s41_s9, %s41_s9 }
  0x18   :  { %p1638_p8 = scmp.ne.s32.totalorder %s41_s9, %s1637_s10  ;;  %p1643_p10 = scmp.lt.s32.totalorder %s1637_s10, %s1637_s10 }
  0x1a   :  { %p1644_p11 = por %p1643_p10, %p1642_p9 }
  0x1c   :  { %p1645_p12 = pnand %p1644_p11, %p1638_p8 }
  0x1e   :  { %1648 = shalt.err (!%p1645_p12)
}
  0x1f   :  { %s1729_s0 = smov [#allocation9]   ;;  %s1730_s11 = smov [#allocation11]  }
  0x20   :  { %43 = dma.vmem_to_smem %s41_s9, 16, %s1729_s0, [#allocation10]  }
  0x21   :  { %s50_s12 = sshll.u32 %s1730_s11, 4  ;;  %s1731_s13 = smov [#allocation12]   ;;  %s51_s12 = int_to_ptr.vmem [resolvable:$true] %s50_s12 }
  0x22   :  { %s59_s14 = sshll.u32 %s1731_s13, 4  ;;  %s1649_s17 = scalar_lea.hbm %s2497_s3, 256  ;;  %s60_s14 = int_to_ptr.vmem [resolvable:$true] %s59_s14 }
  0x23   :  { %p1650_p13 = scmp.ne.s32.totalorder %s2497_s3, %s1649_s17  ;;  %p1653_p0 = scmp.lt.u32.totalorder %s1649_s17, %s2497_s3 }
  0x25   :  { %p1655_p1 = pnand %p1653_p0, %p1650_p13 }
  0x27   :  { %1658 = shalt.err (!%p1655_p1)
}
  0x28   :  { %s1659_s21 = scalar_lea.vmem %s51_s12, 256  ;;  %p1664_p3 = scmp.lt.s32.totalorder %s51_s12, %s51_s12 }
  0x29   :  { %p1660_p2 = scmp.ne.s32.totalorder %s51_s12, %s1659_s21  ;;  %p1665_p4 = scmp.lt.s32.totalorder %s1659_s21, %s1659_s21 }
  0x2b   :  { %p1666_p5 = por %p1665_p4, %p1664_p3 }
  0x2d   :  { %p1667_p6 = pnand %p1666_p5, %p1660_p2 }
  0x2f   :  { %1670 = shalt.err (!%p1667_p6)
}
  0x30   :  { %53 = dma.hbm_to_vmem [thread:$0]  %s2497_s3, 256, %s51_s12, [#allocation4]  }
  0x31   :  { %s1671_s26 = scalar_lea.hbm %s2498_s4, 256 }
  0x32   :  { %p1672_p7 = scmp.ne.s32.totalorder %s2498_s4, %s1671_s26  ;;  %p1675_p8 = scmp.lt.u32.totalorder %s1671_s26, %s2498_s4 }
  0x34   :  { %p1677_p9 = pnand %p1675_p8, %p1672_p7 }
  0x36   :  { %1680 = shalt.err (!%p1677_p9)
}
  0x37   :  { %s1681_s1 = scalar_lea.vmem %s60_s14, 256  ;;  %p1686_p11 = scmp.lt.s32.totalorder %s60_s14, %s60_s14 }
  0x38   :  { %p1682_p10 = scmp.ne.s32.totalorder %s60_s14, %s1681_s1  ;;  %p1687_p12 = scmp.lt.s32.totalorder %s1681_s1, %s1681_s1 }
  0x3a   :  { %p1688_p13 = por %p1687_p12, %p1686_p11 }
  0x3c   :  { %p1689_p0 = pnand %p1688_p13, %p1682_p10 }
  0x3e   :  { %1692 = shalt.err (!%p1689_p0)
}
  0x3f   :  { %s1732_s3 = smov 128   ;;  %s1733_s6 = smov 8  }
  0x40   :  { %65 = dma.hbm_to_vmem [thread:$0]  %s2498_s4, 256, %s60_s14, [#allocation13], %s1732_s3, %s1732_s3, %s1733_s6  }
  0x41   :  { %1715 = dma.done.wait [#allocation6], 16  }
  0x42   :  { %1716 = vsyncadd [#allocation6], 4294967280 }
  0x43   :  { %1717 = dma.done.wait [#allocation7], 16  }
  0x44   :  { %1718 = vsyncadd [#allocation7], 4294967280 }
  0x45   :  { %1719 = dma.done.wait [#allocation10], 16  }
  0x46   :  { %1720 = vsyncadd [#allocation10], 4294967280 }
  0x47   :  { %1721 = dma.done.wait [#allocation4], 256  }
  0x48   :  { %1722 = vsyncadd [#allocation4], 4294967040 }
  0x49   :  { %1723 = dma.done.wait [#allocation13], 256  }
  0x4a   :  { %1724 = vsyncadd [#allocation13], 4294967040 }
  0x4b   :  { %81 = sfence }
  0x4c   :  { %v166_v0 = vlaneseq  ;;  %v1734_v1 = vmov 1983009808   ;;  %v82_v3 = vld [vmem:[#allocation12] sm:$0xff]  ;;  %v83_v4 = vld [vmem:[#allocation12 + $0x8] sm:$0xff]  ;;  %vm90_vm0 = vcmask 1043456   ;;  %s1735_s4 = smov 1  }
  0x4d   :  { %v164_v2 = vunpack.c.l.s4 %v1734_v1  ;;  %v523_v6 = vld [vmem:[#allocation11 + $0x1] ss:$8 sm:$0x3]  ;;  %v86_v7 = vcombine.high %v82_v3, %v82_v3  ;;  %v87_v8 = vcombine.high %v83_v4, %v83_v4  ;;  %v685_v10 = vld [vmem:[#allocation11 + $0x2] ss:$8 sm:$0x3] }
  0x4e   :  { %v1833_v5 = vshrl.u32 %v166_v0, 7  ;;  %v124_v11 = vsel %vm90_vm0, %v82_v3, -inf  ;;  %v138_v12 = vsel %vm90_vm0, %v83_v4, -inf  ;;  %v91_v37 = vsel %vm90_vm0, %v82_v3, 0.0  ;;  %s1736_s9 = smov 2   ;;  %s1738_s10 = smov 51  }
  0x4f   :  { %v165_v9 = vunpack.c.0.s8 %v164_v2  ;;  %v125_v15 = vrot.slane %v124_v11, 4  ;;  %v131_v16 = vsel %vm90_vm0, %v86_v7, -inf  ;;  %v139_v19 = vrot.slane %v138_v12, 4  ;;  %s1739_s0 = smov 3   ;;  %s1489_s11 = sld [smem:[#allocation3 + $0x39]] }
  0x50   :  { %2519 = vst [vmem:[#allocation21_spill] sm:$0xff] %v1833_v5  ;;  %v1838_v13 = vsub.s32 0, %v1833_v5  ;;  %v1841_v14 = vsub.s32 1, %v1833_v5  ;;  %v132_v18 = vrot.slane %v131_v16, 4  ;;  %v145_v20 = vsel %vm90_vm0, %v87_v8, -inf  ;;  %s1490_s12 = sld [smem:[#allocation3 + $0x40]] }
  0x51   :  { %v1845_v17 = vsub.s32 %v165_v9, %v1833_v5  ;;  %v126_v25 = vmax.f32 %v124_v11, %v125_v15  ;;  %v140_v27 = vmax.f32 %v138_v12, %v139_v19  ;;  %v146_v28 = vrot.slane %v145_v20, 4  ;;  %v847_v11 = vld [vmem:[#allocation11 + $0x3] ss:$8 sm:$0x3]  ;;  %s1503_s13 = sld [smem:[#allocation3 + $0x3a]]  ;;  %s1504_s14 = sld [smem:[#allocation3 + $0x41]] }
  0x52   :  { %2520 = vst [vmem:[#allocation22_spill] sm:$0xff] %v1838_v13  ;;  %2521 = vst [vmem:[#allocation23_spill] sm:$0xff] %v1841_v14  ;;  %v528_v21 = vrot.slane %v523_v6, %v1838_v13  ;;  %v532_v22 = vrot.slane %v523_v6, %v1841_v14  ;;  %v690_v23 = vrot.slane %v685_v10, %v1838_v13  ;;  %v92_v42 = vrot.slane %v91_v37, 4  ;;  %s1491_s15 = sld [smem:[#allocation3 + $0x47]]  ;;  %s1492_s16 = sld [smem:[#allocation3 + $0x4e]] }
  0x53   :  { %2522 = vst [vmem:[#allocation24_spill] sm:$0xff] %v1845_v17  ;;  %v694_v24 = vrot.slane %v685_v10, %v1841_v14  ;;  %v133_v26 = vmax.f32 %v131_v16, %v132_v18  ;;  %v127_v31 = vrot.slane %v126_v25, 2  ;;  %v141_v33 = vrot.slane %v140_v27, 2  ;;  %s1517_s17 = sld [smem:[#allocation3 + $0x3b]]  ;;  %s1518_s2 = sld [smem:[#allocation3 + $0x42]] }
  0x54   :  { %v533_v29 = vcombine.low %v528_v21, %v532_v22  ;;  %v147_v34 = vmax.f32 %v145_v20, %v146_v28  ;;  %v98_v43 = vsel %vm90_vm0, %v86_v7, 0.0  ;;  %v105_v44 = vsel %vm90_vm0, %v83_v4, 0.0  ;;  %s1740_s18 = smov 112   ;;  %s1741_s19 = smov 96  }
  0x55   :  { %v695_v30 = vcombine.low %v690_v23, %v694_v24  ;;  %v134_v32 = vrot.slane %v133_v26, 2  ;;  %v128_v38 = vmax.f32 %v126_v25, %v127_v31  ;;  %v142_v40 = vmax.f32 %v140_v27, %v141_v33  ;;  %s1505_s20 = sld [smem:[#allocation3 + $0x48]]  ;;  %s1506_s21 = sld [smem:[#allocation3 + $0x4f]] }
  0x56   :  { %v540_v35 = vrot.slane %v533_v29, %v1845_v17  ;;  %v148_v41 = vrot.slane %v147_v34, 2  ;;  %v112_v45 = vsel %vm90_vm0, %v87_v8, 0.0  ;;  %v93_v50 = vadd.f32 %v92_v42, %v91_v37  ;;  %s1531_s22 = sld [smem:[#allocation3 + $0x3c]]  ;;  %s1532_s23 = sld [smem:[#allocation3 + $0x43]] }
  0x57   :  { %v702_v36 = vrot.slane %v695_v30, %v1845_v17  ;;  %v135_v39 = vmax.f32 %v133_v26, %v134_v32  ;;  %v129_v46 = vrot.slane %v128_v38, 1  ;;  %v143_v48 = vrot.slane %v142_v40, 1  ;;  %s1742_s24 = smov 80   ;;  %s1743_s25 = smov 64  }
  0x58   :  { %541 = vrot.lane.b32.xlu0 %v540_v35, %s1735_s4  ;;  %v149_v49 = vmax.f32 %v147_v34, %v148_v41  ;;  %v99_v51 = vrot.slane %v98_v43, 4  ;;  %v106_v52 = vrot.slane %v105_v44, 4  ;;  %v113_v53 = vrot.slane %v112_v45, 4  ;;  %s1493_s26 = sld [smem:[#allocation3 + $0x55]]  ;;  %s1494_s27 = sld [smem:[#allocation3 + $0x5c]] }
  0x59   :  { %v136_v47 = vrot.slane %v135_v39, 1  ;;  %v130_v54 = vmax.f32 %v128_v38, %v129_v46  ;;  %v144_v56 = vmax.f32 %v142_v40, %v143_v48  ;;  %v94_v58 = vrot.slane %v93_v50, 2  ;;  %s1519_s28 = sld [smem:[#allocation3 + $0x49]]  ;;  %s1520_s29 = sld [smem:[#allocation3 + $0x50]] }
  0x5a   :  { %v150_v57 = vrot.slane %v149_v49, 1  ;;  %v100_v59 = vadd.f32 %v99_v51, %v98_v43  ;;  %v107_v60 = vadd.f32 %v106_v52, %v105_v44  ;;  %v114_v61 = vadd.f32 %v113_v53, %v112_v45  ;;  %s1545_s30 = sld [smem:[#allocation3 + $0x3d]]  ;;  %s1546_s1 = sld [smem:[#allocation3 + $0x44]] }
  0x5b   :  { %v137_v55 = vmax.f32 %v135_v39, %v136_v47  ;;  %v95_v0 = vadd.f32 %v94_v58, %v93_v50  ;;  %vm152_vm1 = vcmask 410624   ;;  %v1737_v10 = vmov 0.0   ;;  %s1507_s7 = sld [smem:[#allocation3 + $0x56]]  ;;  %s1521_s8 = sld [smem:[#allocation3 + $0x57]] }
  0x5c   :  { %703 = vrot.lane.b32.xlu0 %v702_v36, %s1736_s9  ;;  %v151_v62 = vmax.f32 %v149_v49, %v150_v57  ;;  %v101_v1 = vrot.slane %v100_v59, 2  ;;  %v108_v2 = vrot.slane %v107_v60, 2  ;;  %v115_v3 = vrot.slane %v114_v61, 2  ;;  %154 = vst.msk [vmem:[#allocation2 + $0x6] sm:$0x3] %vm152_vm1, %v1737_v10  ;;  %s1744_s4 = smov 48  }
  0x5d   :  { %v207_v63 = vcombine.low %v130_v54, %v137_v55  ;;  %v96_v6 = vrot.slane %v95_v0, 1  ;;  %153 = vst.msk [vmem:[#allocation2] sm:$0x3] %vm152_vm1, %v1737_v10  ;;  %vm183_vm2 = vcmask 1041409   ;;  %vm155_vm3 = vcmask 828824   ;;  %s1745_s9 = smov 32  }
  0x5e   :  { %v215_v4 = vcombine.low %v144_v56, %v151_v62  ;;  %v102_v7 = vadd.f32 %v101_v1, %v100_v59  ;;  %v109_v8 = vadd.f32 %v108_v2, %v107_v60  ;;  %v116_v9 = vadd.f32 %v115_v3, %v114_v61  ;;  %157 = vst.msk [vmem:[#allocation2 + $0xa] sm:$0x3] %vm155_vm3, %v1737_v10 }
  0x5f   :  { %v214_v12 = vrot.slane %v207_v63, %v1845_v17  ;;  %v97_v16 = vadd.f32 %v96_v6, %v95_v0  ;;  %156 = vst.msk [vmem:[#allocation2 + $0x4] sm:$0x3] %vm155_vm3, %v1737_v10  ;;  %vm185_vm4 = vcmask 1043459   ;;  %vm187_vm5 = vcmask 1045509  }
  0x60   :  { %v222_v15 = vrot.slane %v215_v4, %v1845_v17  ;;  %v103_v18 = vrot.slane %v102_v7, 1  ;;  %v110_v19 = vrot.slane %v109_v8, 1  ;;  %v117_v20 = vrot.slane %v116_v9, 1 }
  0x61   :  { %v852_v22 = vrot.slane %v847_v11, %v1838_v13  ;;  %v1861_v26 = vmul.f32 0.25, %v97_v16  ;;  %vm189_vm6 = vcmask 1047559   ;;  %v856_v28 = vrot.slane %v847_v11, %v1841_v14 }
  0x62   :  { %v225_v21 = vrot.slane %v222_v15, 7  ;;  %v104_v23 = vadd.f32 %v103_v18, %v102_v7  ;;  %v111_v24 = vadd.f32 %v110_v19, %v109_v8  ;;  %v118_v25 = vadd.f32 %v117_v20, %v116_v9 }
  0x63   :  { %v857_v34 = vcombine.low %v852_v22, %v856_v28  ;;  %vm197_vm7 = vcmask 1041816   ;;  %vm198_vm8 = vcmask 1043458   ;;  %vm200_vm10 = vcmask 414724  }
  0x64   :  { %v226_v27 = vsel %vm183_vm2, %v225_v21, %v214_v12  ;;  %v1866_v30 = vmul.f32 0.25, %v104_v23  ;;  %v1868_v31 = vmul.f32 0.25, %v111_v24  ;;  %v1870_v32 = vmul.f32 0.25, %v118_v25  ;;  %vm199_vm9 = vmor %vm198_vm8, %vm197_vm7 }
  0x65   :  { %v227_v29 = vsel %vm185_vm4, %v225_v21, %v226_v27  ;;  %v864_v38 = vrot.slane %v857_v34, %v1845_v17  ;;  %vm194_vm11 = vcmask 416768   ;;  %vm1889_vm12 = vmor %vm200_vm10, %vm199_vm9  ;;  %v463_v52 = vstv %s1489_s11  ;;  %s1559_s11 = sld [smem:[#allocation3 + $0x3e]] }
  0x66   :  { %v228_v33 = vsel %vm187_vm5, %v225_v21, %v227_v29  ;;  %v162_v36 = vcombine.low %v1861_v26, %v1866_v30  ;;  %v170_v37 = vcombine.low %v1868_v31, %v1870_v32  ;;  %v473_v53 = vstv %s1490_s12  ;;  %s1535_s12 = sld [smem:[#allocation3 + $0x58]] }
  0x67   :  { %v229_v35 = vsel %vm189_vm6, %v225_v21, %v228_v33  ;;  %865 = vrot.lane.b32.xlu1 %v864_v38, %s1739_s0  ;;  %v625_v58 = vstv %s1503_s13  ;;  %v635_v59 = vstv %s1504_s14  ;;  %v483_v63 = vstv %s1491_s15  ;;  %s1547_s0 = sld [smem:[#allocation3 + $0x4b]]  ;;  %s1508_s13 = sld [smem:[#allocation3 + $0x5d]] }
  0x68   :  { %230 = vrot.lane.b32.xlu0 %v229_v35, %s1738_s10  ;;  %v169_v39 = vrot.slane %v162_v36, %v1845_v17  ;;  %v177_v40 = vrot.slane %v170_v37, %v1845_v17  ;;  %v493_v0 = vstv %s1492_s16  ;;  %v787_v4 = vstv %s1517_s17  ;;  %s1561_s14 = sld [smem:[#allocation3 + $0x4c]]  ;;  %s1534_s15 = sld [smem:[#allocation3 + $0x51]] }
  0x69   :  { %v797_v6 = vstv %s1518_s2  ;;  %v645_v9 = vstv %s1505_s20  ;;  %v655_v10 = vstv %s1506_s21  ;;  %v949_v15 = vstv %s1531_s22  ;;  %s1536_s16 = sld [smem:[#allocation3 + $0x5f]]  ;;  %s1470_s17 = sld [smem:[#allocation3 + $0x15]] }
  0x6a   :  { %v182_v41 = vrot.slane %v177_v40, 7  ;;  %v959_v16 = vstv %s1532_s23  ;;  %v503_v20 = vstv %s1493_s26  ;;  %v513_v21 = vstv %s1494_s27  ;;  %s1560_s2 = sld [smem:[#allocation3 + $0x45]]  ;;  %s1483_s20 = sld [smem:[#allocation3 + $0xf]] }
  0x6b   :  { %v807_v24 = vstv %s1519_s28  ;;  %v817_v25 = vstv %s1520_s29  ;;  %v1111_v29 = vstv %s1545_s30  ;;  %v1121_v33 = vstv %s1546_s1  ;;  %s1522_s21 = sld [smem:[#allocation3 + $0x5e]]  ;;  %s1548_s23 = sld [smem:[#allocation3 + $0x52]] }
  0x6c   :  { %v184_v42 = vsel %vm183_vm2, %v182_v41, %v169_v39  ;;  %v665_v36 = vstv %s1507_s7  ;;  %v827_v37 = vstv %s1521_s8  ;;  %s1484_s22 = sld [smem:[#allocation3 + $0x16]]  ;;  %s1510_s26 = sld [smem:[#allocation3 + $0xa]]  ;;  %vm250_vm13 = vcmask 916480  }
  0x6d   :  { %v186_v43 = vsel %vm185_vm4, %v182_v41, %v184_v42  ;;  %s1468_s27 = sld [smem:[#allocation3 + $0x7]]  ;;  %s1469_s29 = sld [smem:[#allocation3 + $0xe]]  ;;  %vm261_vm14 = vcmask 785408   ;;  %vm272_vm15 = vcmask 654336   ;;  %vm1376_vm0 = vcmask 1041408  }
  0x6e   :  { %v188_v44 = vsel %vm187_vm5, %v182_v41, %v186_v43  ;;  %s1498_s28 = sld [smem:[#allocation3 + $0x17]]  ;;  %s1524_s30 = sld [smem:[#allocation3 + $0xb]]  ;;  %vm544_vm1 = vcmask 7168   ;;  %vm283_vm3 = vcmask 523264   ;;  %vm294_vm4 = vcmask 392192  }
  0x6f   :  { %v190_v45 = vsel %vm189_vm6, %v182_v41, %v188_v44  ;;  %v1131_v41 = vstv %s1547_s0  ;;  %v1273_v44 = vstv %s1559_s11  ;;  %s1482_s1 = sld [smem:[#allocation3 + $0x8]]  ;;  %s1499_s7 = sld [smem:[#allocation3 + $0x1e]]  ;;  %vm868_vm5 = vcmask 23552  }
  0x70   :  { %191 = vrot.lane.b32.xlu0 %v190_v45, %s1738_s10  ;;  %s1533_s10 = sld [smem:[#allocation3 + $0x4a]]  ;;  %v989_v45 = vstv %s1535_s12  ;;  %s1496_s8 = sld [smem:[#allocation3 + $0x9]]  ;;  %vm305_vm6 = vcmask 261120   ;;  %vm1030_vm7 = vcmask 31744   ;;  %vm1192_vm8 = vcmask 39936  }
  0x71   :  { %s1497_s0 = sld [smem:[#allocation3 + $0x10]]  ;;  %s1487_s11 = sld [smem:[#allocation3 + $0x2b]]  ;;  %vm1354_vm9 = vcmask 48128   ;;  %vm552_vm10 = vcmask 1039360  }
  0x72   :  { %s1485_s12 = sld [smem:[#allocation3 + $0x1d]] }
  0x76   :  { %v969_v40 = vstv %s1533_s10  ;;  %s1525_s10 = sld [smem:[#allocation3 + $0x12]] }
  0xca   :  { %v1885_v46 = vpop.permute.xlu0 %541 }
  0xce   :  { %v1887_v47 = vpop.permute.xlu0 %703 }
  0xda   :  { %v231_v48 = vpop.permute.xlu0 %230 }
  0xdb   :  { %v232_v50 = vrot.slane %v231_v48, 6 }
  0xdd   :  { %v233_v51 = vsel %vm194_vm11, %v232_v50, %v231_v48  ;;  %v675_v50 = vstv %s1508_s13  ;;  %s1513_s13 = sld [smem:[#allocation3 + $0x1f]] }
  0xde   :  { %236 = vst.msk [vmem:[#allocation2 + $0x6] sm:$0x3f] %vm1889_vm12, %v233_v51  ;;  %v1293_v51 = vstv %s1561_s14  ;;  %s1511_s14 = sld [smem:[#allocation3 + $0x11]] }
  0xe2   :  { %v192_v54 = vpop.permute.xlu0 %191 }
  0xe3   :  { %v193_v60 = vrot.slane %v192_v54, 6 }
  0xe5   :  { %v1896_v55 = vld [vmem:[#allocation2 + $0x6] sm:$0x3f]  ;;  %v195_v1 = vsel %vm194_vm11, %v193_v60, %v192_v54  ;;  %v979_v54 = vstv %s1534_s15  ;;  %s1539_s15 = sld [smem:[#allocation3 + $0x13]]  ;;  %vm714_vm11 = vcmask 1031168  }
  0xe6   :  { %v464_v56 = vmul.f32 %v463_v52, %v1896_v55  ;;  %v474_v57 = vmul.f32 %v473_v53, %v1896_v55  ;;  %v626_v61 = vmul.f32 %v625_v58, %v1896_v55  ;;  %v636_v62 = vmul.f32 %v635_v59, %v1896_v55  ;;  %202 = vst.msk [vmem:[#allocation2] sm:$0x3f] %vm1889_vm12, %v195_v1 }
  0xe7   :  { %v484_v2 = vmul.f32 %v483_v63, %v1896_v55  ;;  %v494_v3 = vmul.f32 %v493_v0, %v1896_v55  ;;  %v788_v7 = vmul.f32 %v787_v4, %v1896_v55  ;;  %v798_v8 = vmul.f32 %v797_v6, %v1896_v55 }
  0xe8   :  { %466 = vrot.lane.b32.xlu1 %v464_v56, %s1740_s18  ;;  %476 = vrot.lane.b32.xlu0 %v474_v57, %s1741_s19  ;;  %v646_v11 = vmul.f32 %v645_v9, %v1896_v55  ;;  %v656_v12 = vmul.f32 %v655_v10, %v1896_v55  ;;  %v950_v18 = vmul.f32 %v949_v15, %v1896_v55  ;;  %v999_v56 = vstv %s1536_s16  ;;  %s1486_s16 = sld [smem:[#allocation3 + $0x24]] }
  0xe9   :  { %v960_v19 = vmul.f32 %v959_v16, %v1896_v55  ;;  %v504_v22 = vmul.f32 %v503_v20, %v1896_v55  ;;  %v514_v23 = vmul.f32 %v513_v21, %v1896_v55  ;;  %v808_v27 = vmul.f32 %v807_v24, %v1896_v55 }
  0xea   :  { %v818_v28 = vmul.f32 %v817_v25, %v1896_v55  ;;  %v1112_v34 = vmul.f32 %v1111_v29, %v1896_v55  ;;  %v1122_v35 = vmul.f32 %v1121_v33, %v1896_v55  ;;  %v666_v38 = vmul.f32 %v665_v36, %v1896_v55 }
  0xeb   :  { %v828_v39 = vmul.f32 %v827_v37, %v1896_v55  ;;  %v970_v42 = vmul.f32 %v969_v40, %v1896_v55  ;;  %v1132_v43 = vmul.f32 %v1131_v41, %v1896_v55  ;;  %v1274_v48 = vmul.f32 %v1273_v44, %v1896_v55 }
  0xec   :  { %628 = vrot.lane.b32.xlu1 %v626_v61, %s1740_s18  ;;  %638 = vrot.lane.b32.xlu0 %v636_v62, %s1741_s19  ;;  %v990_v49 = vmul.f32 %v989_v45, %v1896_v55  ;;  %v676_v52 = vmul.f32 %v675_v50, %v1896_v55  ;;  %v1294_v53 = vmul.f32 %v1293_v51, %v1896_v55  ;;  %v266_v58 = vstv %s1470_s17  ;;  %s1501_s17 = sld [smem:[#allocation3 + $0x2c]] }
  0xed   :  { %v1953_v57 = vld [vmem:[#allocation2] sm:$0x3f]  ;;  %v980_v59 = vmul.f32 %v979_v54, %v1896_v55  ;;  %v1000_v60 = vmul.f32 %v999_v56, %v1896_v55  ;;  %v1283_v61 = vstv %s1560_s2  ;;  %v409_v63 = vstv %s1483_s20  ;;  %s1512_s2 = sld [smem:[#allocation3 + $0x18]] }
  0xee   :  { %v267_v62 = vmul.f32 %v266_v58, %v1953_v57  ;;  %v1284_v0 = vmul.f32 %v1283_v61, %v1896_v55  ;;  %v837_v1 = vstv %s1522_s21  ;;  %v1141_v6 = vstv %s1548_s23  ;;  %s1527_s20 = sld [smem:[#allocation3 + $0x20]]  ;;  %s1538_s21 = sld [smem:[#allocation3 + $0xc]] }
  0xef   :  { %v838_v4 = vmul.f32 %v837_v1, %v1896_v55  ;;  %v723_v9 = vstv %s1510_s26  ;;  %v244_v10 = vstv %s1468_s27  ;;  %v581_v15 = vstv %s1498_s28  ;;  %s1500_s23 = sld [smem:[#allocation3 + $0x25]]  ;;  %s1526_s27 = sld [smem:[#allocation3 + $0x19]] }
  0xf0   :  { %486 = vrot.lane.b32.xlu1 %v484_v2, %s1742_s24  ;;  %496 = vrot.lane.b32.xlu0 %v494_v3, %s1743_s25  ;;  %v410_v2 = vmul.f32 %v409_v63, %v1953_v57  ;;  %v419_v3 = vstv %s1484_s22  ;;  %v255_v16 = vstv %s1469_s29  ;;  %s1553_s22 = sld [smem:[#allocation3 + $0x14]]  ;;  %s1515_s26 = sld [smem:[#allocation3 + $0x2d]]  ;;  %vm876_vm12 = vcmask 1022976  }
  0xf1   :  { %v885_v20 = vstv %s1524_s30  ;;  %v399_v21 = vstv %s1482_s1  ;;  %v591_v24 = vstv %s1499_s7  ;;  %v561_v25 = vstv %s1496_s8  ;;  %s1541_s28 = sld [smem:[#allocation3 + $0x21]]  ;;  %s1552_s29 = sld [smem:[#allocation3 + $0xd]] }
  0xf2   :  { %v895_v29 = vstv %s1525_s10  ;;  %v571_v33 = vstv %s1497_s0  ;;  %v449_v36 = vstv %s1487_s11  ;;  %v429_v37 = vstv %s1485_s12  ;;  %s1529_s30 = sld [smem:[#allocation3 + $0x2e]]  ;;  %s1555_s7 = sld [smem:[#allocation3 + $0x22]] }
  0xf3   :  { %v753_v40 = vstv %s1513_s13  ;;  %v733_v41 = vstv %s1511_s14  ;;  %v1057_v44 = vstv %s1539_s15  ;;  %v439_v45 = vstv %s1486_s16  ;;  %s1514_s1 = sld [smem:[#allocation3 + $0x26]]  ;;  %s1540_s8 = sld [smem:[#allocation3 + $0x1a]] }
  0xf4   :  { %790 = vrot.lane.b32.xlu1 %v788_v7, %s1740_s18  ;;  %800 = vrot.lane.b32.xlu0 %v798_v8, %s1741_s19  ;;  %v420_v7 = vmul.f32 %v419_v3, %v1953_v57  ;;  %v1142_v8 = vmul.f32 %v1141_v6, %v1896_v55  ;;  %v611_v50 = vstv %s1501_s17  ;;  %v743_v51 = vstv %s1512_s2  ;;  %s1543_s10 = sld [smem:[#allocation3 + $0x2f]]  ;;  %s1557_s11 = sld [smem:[#allocation3 + $0x30]] }
  0xf5   :  { %v915_v54 = vstv %s1527_s20  ;;  %v1047_v56 = vstv %s1538_s21  ;;  %v601_v61 = vstv %s1500_s23  ;;  %v905_v1 = vstv %s1526_s27  ;;  %s1528_s0 = sld [smem:[#allocation3 + $0x27]]  ;;  %s1554_s12 = sld [smem:[#allocation3 + $0x1b]] }
  0xf6   :  { %v916_v58 = vmul.f32 %v915_v54, %v1953_v57  ;;  %v602_v63 = vmul.f32 %v601_v61, %v1953_v57  ;;  %s1562_s13 = sld [smem:[#allocation3 + $0x53]]  ;;  %s1542_s14 = sld [smem:[#allocation3 + $0x28]] }
  0xf7   :  { %v1077_v6 = vstv %s1541_s28  ;;  %s2051_s15 = sld [smem:[#allocation3 + $0x60]]  ;;  %s2053_s16 = sld [smem:[#allocation3 + $0x29]] }
  0xf8   :  { %648 = vrot.lane.b32.xlu1 %v646_v11, %s1742_s24  ;;  %658 = vrot.lane.b32.xlu0 %v656_v12, %s1743_s25  ;;  %v724_v11 = vmul.f32 %v723_v9, %v1953_v57  ;;  %v245_v12 = vmul.f32 %v244_v10, %v1953_v57  ;;  %v1078_v10 = vmul.f32 %v1077_v6, %v1953_v57  ;;  %s2063_s17 = sld [smem:[#allocation3 + $0x59]]  ;;  %s1472_s2 = sld [smem:[#allocation3 + $0x23]] }
  0xf9   :  { %s1563_s20 = sld [smem:[#allocation3 + $0x5a]]  ;;  %s1475_s21 = sld [smem:[#allocation3 + $0x38]] }
  0xfa   :  { %s1746_s23 = smov 5   ;;  %s1471_s27 = sld [smem:[#allocation3 + $0x1c]] }
  0xfb   :  { %s1747_s28 = smov 6  }
  0xfc   :  { %952 = vrot.lane.b32.xlu1 %v950_v18, %s1740_s18  ;;  %962 = vrot.lane.b32.xlu0 %v960_v19, %s1741_s19  ;;  %v582_v18 = vmul.f32 %v581_v15, %v1953_v57  ;;  %v256_v19 = vmul.f32 %v255_v16, %v1953_v57  ;;  %v763_v15 = vstv %s1514_s1  ;;  %s1473_s1 = sld [smem:[#allocation3 + $0x2a]] }
 0x100   :  { %506 = vrot.lane.b32.xlu1 %v504_v22, %s1744_s4  ;;  %516 = vrot.lane.b32.xlu0 %v514_v23, %s1745_s9  ;;  %v886_v22 = vmul.f32 %v885_v20, %v1953_v57  ;;  %v400_v23 = vmul.f32 %v399_v21, %v1953_v57  ;;  %v764_v20 = vmul.f32 %v763_v15, %v1953_v57  ;;  %v1239_v21 = vstv %s1555_s7  ;;  %s1479_s7 = sld [smem:[#allocation3 + $0x54]] }
 0x104   :  { %810 = vrot.lane.b32.xlu1 %v808_v27, %s1742_s24  ;;  %820 = vrot.lane.b32.xlu0 %v818_v28, %s1743_s25  ;;  %v592_v27 = vmul.f32 %v591_v24, %v1953_v57  ;;  %v562_v28 = vmul.f32 %v561_v25, %v1953_v57  ;;  %v1240_v25 = vmul.f32 %v1239_v21, %v1953_v57 }
 0x108   :  { %1114 = vrot.lane.b32.xlu1 %v1112_v34, %s1740_s18  ;;  %1124 = vrot.lane.b32.xlu0 %v1122_v35, %s1741_s19  ;;  %v896_v34 = vmul.f32 %v895_v29, %v1953_v57  ;;  %v572_v35 = vmul.f32 %v571_v33, %v1953_v57  ;;  %v925_v29 = vstv %s1528_s0  ;;  %s2186_s0 = sld [smem:[#allocation3 + $0x36]] }
 0x10c   :  { %668 = vrot.lane.b32.xlu1 %v666_v38, %s1744_s4  ;;  %830 = vrot.lane.b32.xlu0 %v828_v39, %s1744_s4  ;;  %v450_v38 = vmul.f32 %v449_v36, %v1953_v57  ;;  %v430_v39 = vmul.f32 %v429_v37, %v1953_v57  ;;  %v926_v36 = vmul.f32 %v925_v29, %v1953_v57  ;;  %v1259_v37 = vstv %s1557_s11  ;;  %s2188_s11 = sld [smem:[#allocation3 + $0x3]] }
 0x10d   :  { %v1313_v29 = vstv %s1563_s20  ;;  %s1751_s20 = smov 125  }
 0x10e   :  { %v1107_v5 = vstv %s2186_s0 }
 0x110   :  { %972 = vrot.lane.b32.xlu1 %v970_v42, %s1742_s24  ;;  %1134 = vrot.lane.b32.xlu0 %v1132_v43, %s1742_s24  ;;  %v754_v42 = vmul.f32 %v753_v40, %v1953_v57  ;;  %v734_v43 = vmul.f32 %v733_v41, %v1953_v57 }
 0x114   :  { %1276 = vrot.lane.b32.xlu1 %v1274_v48, %s1740_s18  ;;  %992 = vrot.lane.b32.xlu0 %v990_v49, %s1744_s4  ;;  %v1058_v48 = vmul.f32 %v1057_v44, %v1953_v57  ;;  %v440_v49 = vmul.f32 %v439_v45, %v1953_v57  ;;  %v1303_v44 = vstv %s1562_s13  ;;  %v1087_v45 = vstv %s1542_s14  ;;  %s2193_s13 = sld [smem:[#allocation3 + $0x2]]  ;;  %s2195_s14 = sld [smem:[#allocation3 + $0x4]] }
 0x115   :  { %v1304_v54 = vmul.f32 %v1303_v44, %v1896_v55 }
 0x118   :  { %678 = vrot.lane.b32.xlu1 %v676_v52, %s1745_s9  ;;  %1296 = vrot.lane.b32.xlu0 %v1294_v53, %s1742_s24  ;;  %v612_v52 = vmul.f32 %v611_v50, %v1953_v57  ;;  %v744_v53 = vmul.f32 %v743_v51, %v1953_v57  ;;  %v1333_v50 = vld [vmem:[#allocation11 + $0x6] ss:$8 sm:$0x3]  ;;  %v1009_v51 = vld [vmem:[#allocation11 + $0x4] ss:$8 sm:$0x3] }
 0x119   :  { %v1342_v61 = vrot.slane %v1333_v50, %v1841_v14 }
 0x11c   :  { %982 = vrot.lane.b32.xlu1 %v980_v59, %s1743_s25  ;;  %1002 = vrot.lane.b32.xlu0 %v1000_v60, %s1745_s9  ;;  %v1048_v59 = vmul.f32 %v1047_v56, %v1953_v57  ;;  %v1219_v60 = vstv %s1553_s22  ;;  %v1088_v56 = vmul.f32 %v1087_v45, %v1953_v57  ;;  %s1564_s22 = sld [smem:[#allocation3 + $0x61]] }
 0x120   :  { %1286 = vrot.lane.b32.xlu1 %v1284_v0, %s1741_s19  ;;  %269 = vrot.lane.b32.xlu0 %v267_v62, %s1742_s24  ;;  %v1220_v62 = vmul.f32 %v1219_v60, %v1953_v57  ;;  %v773_v0 = vstv %s1515_s26  ;;  %v1338_v60 = vrot.slane %v1333_v50, %v1838_v13  ;;  %s1477_s26 = sld [smem:[#allocation3 + $0x46]]  ;;  %v277_v50 = vstv %s1471_s27  ;;  %s1565_s27 = sld [smem:[#allocation8 + $0x1]] }
 0x121   :  { %v774_v3 = vmul.f32 %v773_v0, %v1953_v57  ;;  %v1018_v0 = vrot.slane %v1009_v51, %v1841_v14 }
 0x124   :  { %840 = vrot.lane.b32.xlu1 %v838_v4, %s1745_s9  ;;  %412 = vrot.lane.b32.xlu0 %v410_v2, %s1741_s19  ;;  %v2015_v2 = vpop.permute.xlu1 %865  ;;  %v906_v4 = vmul.f32 %v905_v1, %v1953_v57 }
 0x128   :  { %1144 = vrot.lane.b32.xlu1 %v1142_v8, %s1743_s25  ;;  %422 = vrot.lane.b32.xlu0 %v420_v7, %s1742_s24  ;;  %v1209_v7 = vstv %s1552_s29  ;;  %s1748_s29 = smov 4  }
 0x12c   :  { %726 = vrot.lane.b32.xlu0 %v724_v11, %s1740_s18  ;;  %247 = vrot.lane.b32.xlu1 %v245_v12, %s1740_s18  ;;  %v1210_v11 = vmul.f32 %v1209_v7, %v1953_v57  ;;  %v935_v12 = vstv %s1529_s30  ;;  %v1151_v7 = vstv %s2063_s17  ;;  %s1478_s30 = sld [smem:[#allocation3 + $0x4d]]  ;;  %s1749_s17 = smov 127  }
 0x130   :  { %584 = vrot.lane.b32.xlu0 %v582_v18, %s1742_s24  ;;  %258 = vrot.lane.b32.xlu1 %v256_v19, %s1741_s19  ;;  %v936_v19 = vmul.f32 %v935_v12, %v1953_v57 }
 0x134   :  { %888 = vrot.lane.b32.xlu0 %v886_v22, %s1740_s18  ;;  %402 = vrot.lane.b32.xlu1 %v400_v23, %s1740_s18  ;;  %v1067_v22 = vstv %s1540_s8  ;;  %s1476_s8 = sld [smem:[#allocation3 + $0x3f]] }
 0x138   :  { %594 = vrot.lane.b32.xlu0 %v592_v27, %s1743_s25  ;;  %564 = vrot.lane.b32.xlu1 %v562_v28, %s1740_s18  ;;  %v1068_v27 = vmul.f32 %v1067_v22, %v1953_v57  ;;  %v1097_v28 = vstv %s1543_s10  ;;  %s1480_s10 = sld [smem:[#allocation3 + $0x5b]] }
 0x13c   :  { %898 = vrot.lane.b32.xlu0 %v896_v34, %s1741_s19  ;;  %574 = vrot.lane.b32.xlu1 %v572_v35, %s1741_s19  ;;  %v1098_v35 = vmul.f32 %v1097_v28, %v1953_v57  ;;  %v288_v28 = vstv %s1472_s2  ;;  %s1750_s2 = smov 126  }
 0x140   :  { %452 = vrot.lane.b32.xlu0 %v450_v38, %s1745_s9  ;;  %432 = vrot.lane.b32.xlu1 %v430_v39, %s1743_s25  ;;  %v1229_v38 = vstv %s1554_s12  ;;  %v1171_v39 = vld [vmem:[#allocation11 + $0x5] ss:$8 sm:$0x3]  ;;  %s2191_s12 = sld [smem:[#allocation3 + $0x37]] }
 0x144   :  { %756 = vrot.lane.b32.xlu0 %v754_v42, %s1743_s25  ;;  %736 = vrot.lane.b32.xlu1 %v734_v43, %s1741_s19  ;;  %v1260_v42 = vmul.f32 %v1259_v37, %v1953_v57  ;;  %v1230_v43 = vmul.f32 %v1229_v38, %v1953_v57  ;;  %v289_v37 = vmul.f32 %v288_v28, %v1953_v57 }
 0x145   :  { %v1314_v38 = vmul.f32 %v1313_v29, %v1896_v55 }
 0x148   :  { %1060 = vrot.lane.b32.xlu0 %v1058_v48, %s1741_s19  ;;  %442 = vrot.lane.b32.xlu1 %v440_v49, %s1744_s4  ;;  %v1176_v48 = vrot.slane %v1171_v39, %v1838_v13  ;;  %v1180_v49 = vrot.slane %v1171_v39, %v1841_v14  ;;  %v314_v39 = vstv %s1475_s21  ;;  %s1752_s21 = smov 124  }
 0x149   :  { %v315_v45 = vmul.f32 %v314_v39, %v1896_v55 }
 0x14c   :  { %614 = vrot.lane.b32.xlu0 %v612_v52, %s1745_s9  ;;  %746 = vrot.lane.b32.xlu1 %v744_v53, %s1742_s24 }
 0x150   :  { %918 = vrot.lane.b32.xlu0 %v916_v58, %s1743_s25  ;;  %1050 = vrot.lane.b32.xlu1 %v1048_v59, %s1740_s18  ;;  %v1161_v58 = vstv %s2051_s15  ;;  %v1249_v59 = vstv %s2053_s16  ;;  %s2197_s15 = sld [smem:[#allocation3 + $0x5]]  ;;  %s2201_s16 = sld [smem:[#allocation3 + $0x6]] }
 0x151   :  { %v1250_v6 = vmul.f32 %v1249_v59, %v1953_v57  ;;  %v344_v59 = vstv %s1478_s30 }
 0x154   :  { %1222 = vrot.lane.b32.xlu0 %v1220_v62, %s1741_s19  ;;  %604 = vrot.lane.b32.xlu1 %v602_v63, %s1744_s4  ;;  %v1181_v62 = vcombine.low %v1176_v48, %v1180_v49  ;;  %v1014_v63 = vrot.slane %v1009_v51, %v1838_v13  ;;  %v334_v49 = vstv %s1477_s26  ;;  %v557_v13 = vstv %s2193_s13  ;;  %s1754_s26 = smov 122  }
 0x156   :  { %v1019_v12 = vcombine.low %v1014_v63, %v1018_v0  ;;  %v345_v63 = vmul.f32 %v344_v59, %v1896_v55 }
 0x158   :  { %776 = vrot.lane.b32.xlu0 %v774_v3, %s1745_s9  ;;  %908 = vrot.lane.b32.xlu1 %v906_v4, %s1742_s24  ;;  %v1162_v4 = vmul.f32 %v1161_v58, %v1896_v55  ;;  %v1026_v22 = vrot.slane %v1019_v12, %v1845_v17  ;;  %v278_v58 = vmul.f32 %v277_v50, %v1953_v57 }
 0x15a   :  { %v2021_v8 = vpop.permute.xlu1 %466  ;;  %v2023_v9 = vpop.permute.xlu0 %476 }
 0x15c   :  { %1080 = vrot.lane.b32.xlu0 %v1078_v10, %s1743_s25  ;;  %1212 = vrot.lane.b32.xlu1 %v1210_v11, %s1740_s18  ;;  %v1188_v10 = vrot.slane %v1181_v62, %v1845_v17  ;;  %v1343_v11 = vcombine.low %v1338_v60, %v1342_v61  ;;  %v299_v60 = vstv %s1473_s1 }
 0x15d   :  { %v300_v0 = vmul.f32 %v299_v60, %v1953_v57 }
 0x15e   :  { %v2029_v16 = vpop.permute.xlu1 %628  ;;  %v2031_v18 = vpop.permute.xlu0 %638  ;;  %v1350_v21 = vrot.slane %v1343_v11, %v1845_v17  ;;  %v1269_v17 = vstv %s2191_s12 }
 0x160   :  { %938 = vrot.lane.b32.xlu0 %v936_v19, %s1745_s9  ;;  %766 = vrot.lane.b32.xlu1 %v764_v20, %s1744_s4  ;;  %v1152_v20 = vmul.f32 %v1151_v7, %v1896_v55 }
 0x162   :  { %v2037_v23 = vpop.permute.xlu1 %486  ;;  %v2039_v24 = vpop.permute.xlu0 %496 }
 0x164   :  { %1242 = vrot.lane.b32.xlu0 %v1240_v25, %s1743_s25  ;;  %1070 = vrot.lane.b32.xlu1 %v1068_v27, %s1742_s24 }
 0x166   :  { %v2045_v33 = vpop.permute.xlu1 %790  ;;  %v2047_v34 = vpop.permute.xlu0 %800 }
 0x168   :  { %1100 = vrot.lane.b32.xlu0 %v1098_v35, %s1745_s9  ;;  %928 = vrot.lane.b32.xlu1 %v926_v36, %s1744_s4 }
 0x16a   :  { %v2057_v40 = vpop.permute.xlu1 %648  ;;  %v2059_v41 = vpop.permute.xlu0 %658 }
 0x16c   :  { %1262 = vrot.lane.b32.xlu0 %v1260_v42, %s1745_s9  ;;  %1232 = vrot.lane.b32.xlu1 %v1230_v43, %s1742_s24  ;;  %v1323_v42 = vstv %s1564_s22  ;;  %s1474_s22 = sld [smem:[#allocation3 + $0x31]] }
 0x16d   :  { %v1324_v48 = vmul.f32 %v1323_v42, %v1896_v55 }
 0x16e   :  { %v2069_v52 = vpop.permute.xlu1 %952  ;;  %v2071_v53 = vpop.permute.xlu0 %962 }
 0x170   :  { %1306 = vrot.lane.b32.xlu0 %v1304_v54, %s1743_s25  ;;  %1090 = vrot.lane.b32.xlu1 %v1088_v56, %s1744_s4  ;;  %v335_v56 = vmul.f32 %v334_v49, %v1896_v55 }
 0x172   :  { %v2083_v1 = vpop.permute.xlu1 %506  ;;  %v2085_v3 = vpop.permute.xlu0 %516 }
 0x174   :  { %1164 = vrot.lane.b32.xlu0 %v1162_v4, %s1745_s9  ;;  %1252 = vrot.lane.b32.xlu1 %v1250_v6, %s1744_s4  ;;  %v354_v4 = vstv %s1479_s7  ;;  %v324_v6 = vstv %s1476_s8 }
 0x175   :  { %v355_v11 = vmul.f32 %v354_v4, %v1896_v55  ;;  %v325_v12 = vmul.f32 %v324_v6, %v1896_v55 }
 0x176   :  { %v2093_v15 = vpop.permute.xlu1 %810  ;;  %v2095_v19 = vpop.permute.xlu0 %820 }
 0x178   :  { %1189 = vrot.lane.b32.xlu0 %v1188_v10, %s1746_s23  ;;  %1154 = vrot.lane.b32.xlu1 %v1152_v20, %s1744_s4  ;;  %v364_v20 = vstv %s1480_s10  ;;  %s1753_s23 = smov 123  }
 0x179   :  { %v365_v28 = vmul.f32 %v364_v20, %v1896_v55 }
 0x17a   :  { %v2101_v25 = vpop.permute.xlu1 %1114  ;;  %v2103_v27 = vpop.permute.xlu0 %1124 }
 0x17b   :  { %2525 = vst [vmem:[#allocation25_spill] sm:$0xff] %v2101_v25  ;;  %2526 = vst [vmem:[#allocation26_spill] sm:$0xff] %v2103_v27 }
 0x17c   :  { %1351 = vrot.lane.b32.xlu0 %v1350_v21, %s1747_s28  ;;  %1027 = vrot.lane.b32.xlu1 %v1026_v22, %s1748_s29  ;;  %s1566_s28 = sld [smem:[#allocation9 + $0x1]]  ;;  %s1757_s29 = smov [#allocation14]  }
 0x17d   :  { %s1452_s30 = sshll.u32 %s1757_s29, 4  ;;  %s1453_s30 = int_to_ptr.vmem [resolvable:$true] %s1452_s30 }
 0x17e   :  { %v2105_v35 = vpop.permute.xlu1 %668  ;;  %v2107_v36 = vpop.permute.xlu0 %830  ;;  %s1693_s1 = scalar_lea.vmem %s1453_s30, 256  ;;  %p1698_p2 = scmp.lt.s32.totalorder %s1453_s30, %s1453_s30 }
 0x17f   :  { %p1694_p1 = scmp.ne.s32.totalorder %s1453_s30, %s1693_s1  ;;  %p1699_p3 = scmp.lt.s32.totalorder %s1693_s1, %s1693_s1 }
 0x180   :  { %291 = vrot.lane.b32.xlu0 %v289_v37, %s1744_s4  ;;  %1316 = vrot.lane.b32.xlu1 %v1314_v38, %s1744_s4 }
 0x181   :  { %p1700_p4 = por %p1699_p3, %p1698_p2 }
 0x182   :  { %v2113_v43 = vpop.permute.xlu1 %972  ;;  %v2115_v44 = vpop.permute.xlu0 %1134 }
 0x183   :  { %2527 = vst [vmem:[#allocation27_spill] sm:$0xff] %v2113_v43  ;;  %2528 = vst [vmem:[#allocation28_spill] sm:$0xff] %v2115_v44  ;;  %v1043_v44 = vstv %s2197_s15  ;;  %p1701_p5 = pnand %p1700_p4, %p1694_p1 }
 0x184   :  { %317 = vrot.lane.b32.xlu0 %v315_v45, %s1740_s18  ;;  %1326 = vrot.lane.b32.xlu1 %v1324_v48, %s1745_s9  ;;  %s239_s18 = sld [smem:[#allocation3]] }
 0x186   :  { %v2121_v51 = vpop.permute.xlu1 %1276  ;;  %v2123_v54 = vpop.permute.xlu0 %992 }
 0x187   :  { %2529 = vst [vmem:[#allocation29_spill] sm:$0xff] %v2121_v51  ;;  %2530 = vst [vmem:[#allocation30_spill] sm:$0xff] %v2123_v54 }
 0x188   :  { %337 = vrot.lane.b32.xlu0 %v335_v56, %s1742_s24  ;;  %280 = vrot.lane.b32.xlu1 %v278_v58, %s1743_s25  ;;  %s2175_s24 = sld [smem:[#allocation3 + $0x32]] }
 0x18a   :  { %v2129_v61 = vpop.permute.xlu1 %678  ;;  %v2131_v62 = vpop.permute.xlu0 %1296  ;;  %v240_v42 = vstv %s239_s18 }
 0x18b   :  { %2531 = vst [vmem:[#allocation31_spill] sm:$0xff] %v2131_v62  ;;  %v241_v50 = vmul.f32 %v240_v42, %v1953_v57  ;;  %v881_v62 = vstv %s2195_s14 }
 0x18c   :  { %347 = vrot.lane.b32.xlu0 %v345_v63, %s1743_s25  ;;  %302 = vrot.lane.b32.xlu1 %v300_v0, %s1745_s9  ;;  %s2179_s25 = sld [smem:[#allocation3 + $0x33]] }
 0x18e   :  { %v2137_v7 = vpop.permute.xlu1 %982  ;;  %v2139_v10 = vpop.permute.xlu0 %1002 }
 0x18f   :  { %2532 = vst [vmem:[#allocation32_spill] sm:$0xff] %v2137_v7  ;;  %2533 = vst [vmem:[#allocation33_spill] sm:$0xff] %v2139_v10  ;;  %v705_v10 = vrot.slane %v1887_v47, 6 }
 0x190   :  { %357 = vrot.lane.b32.xlu0 %v355_v11, %s1744_s4  ;;  %327 = vrot.lane.b32.xlu1 %v325_v12, %s1741_s19  ;;  %s1481_s19 = sld [smem:[#allocation3 + $0x1]]  ;;  %s2181_s4 = sld [smem:[#allocation3 + $0x34]] }
 0x192   :  { %v2145_v21 = vpop.permute.xlu1 %1286  ;;  %v270_v22 = vpop.permute.xlu0 %269 }
 0x193   :  { %2534 = vst [vmem:[#allocation34_spill] sm:$0xff] %v2145_v21  ;;  %v271_v63 = vrot.slane %v270_v22, 2 }
 0x194   :  { %367 = vrot.lane.b32.xlu0 %v365_v28, %s1745_s9  ;;  %s2184_s9 = sld [smem:[#allocation3 + $0x35]] }
 0x195   :  { %v273_v20 = vsel %vm272_vm15, %v270_v22, %v271_v63 }
 0x196   :  { %v2149_v29 = vpop.permute.xlu1 %840  ;;  %v413_v37 = vpop.permute.xlu0 %412 }
 0x197   :  { %2535 = vst [vmem:[#allocation35_spill] sm:$0xff] %v2149_v29 }
 0x19a   :  { %v2151_v38 = vpop.permute.xlu1 %1144  ;;  %v2153_v39 = vpop.permute.xlu0 %422 }
 0x19b   :  { %2536 = vst [vmem:[#allocation36_spill] sm:$0xff] %v2151_v38 }
 0x19e   :  { %v248_v45 = vpop.permute.xlu1 %247  ;;  %v2155_v48 = vpop.permute.xlu0 %726 }
 0x19f   :  { %v249_v49 = vrot.slane %v248_v45, 2 }
 0x1a1   :  { %v251_v56 = vsel %vm250_vm13, %v248_v45, %v249_v49  ;;  %v1372_v49 = vsel %vm183_vm2, %v1868_v31, %v1861_v26 }
 0x1a2   :  { %v253_v58 = vadd.f32 %v251_v56, %v241_v50  ;;  %v259_v59 = vpop.permute.xlu1 %258  ;;  %v2159_v60 = vpop.permute.xlu0 %584  ;;  %v1373_v50 = vsel %vm183_vm2, %v1870_v32, %v1866_v30  ;;  %v414_v32 = vrot.slane %v413_v37, 2  ;;  %vm706_vm2 = vcmask 15360  }
 0x1a3   :  { %v260_v0 = vrot.slane %v259_v59, 2  ;;  %v1378_v22 = vsel %vm1376_vm0, %v1373_v50, 0.0 }
 0x1a5   :  { %v262_v4 = vsel %vm261_vm14, %v259_v59, %v260_v0  ;;  %v1377_v59 = vsel %vm1376_vm0, %v1372_v49, 0.0  ;;  %v424_v49 = vrot.slane %v2153_v39, 2 }
 0x1a6   :  { %v264_v6 = vadd.f32 %v262_v4, %v253_v58  ;;  %v403_v11 = vpop.permute.xlu1 %402  ;;  %v2162_v12 = vpop.permute.xlu0 %888  ;;  %v395_v58 = vstv %s1481_s19  ;;  %v1379_v31 = vadd.f32 %v1378_v22, %v1377_v59  ;;  %v459_v22 = vstv %s2175_s24 }
 0x1a7   :  { %v404_v56 = vrot.slane %v403_v11, 2  ;;  %v396_v30 = vmul.f32 %v395_v58, %v1953_v57  ;;  %v425_v14 = vsel %vm272_vm15, %v2153_v39, %v424_v49  ;;  %v867_v39 = vrot.slane %v2015_v2, 6 }
 0x1a8   :  { %v2165_v28 = vadd.f32 %v273_v20, %v264_v6  ;;  %v415_v20 = vsel %vm261_vm14, %v413_v37, %v414_v32  ;;  %v783_v37 = vstv %s2181_s4  ;;  %v719_v32 = vstv %s2188_s11 }
 0x1a9   :  { %v405_v26 = vsel %vm250_vm13, %v403_v11, %v404_v56 }
 0x1aa   :  { %2537 = vst [vmem:[#allocation37_spill] sm:$0xff] %v2165_v28  ;;  %v565_v42 = vpop.permute.xlu1 %564  ;;  %v2167_v45 = vpop.permute.xlu0 %594  ;;  %v407_v4 = vadd.f32 %v405_v26, %v396_v30  ;;  %v621_v30 = vstv %s2179_s25  ;;  %v543_v28 = vrot.slane %v1885_v46, 6 }
 0x1ab   :  { %v566_v26 = vrot.slane %v565_v42, 2 }
 0x1ac   :  { %v417_v56 = vadd.f32 %v415_v20, %v407_v4  ;;  %v2232_v29 = vsel %vm544_vm1, %v543_v28, %v1885_v46 }
 0x1ad   :  { %v567_v27 = vsel %vm250_vm13, %v565_v42, %v566_v26 }
 0x1ae   :  { %v575_v63 = vpop.permute.xlu1 %574  ;;  %v2177_v0 = vpop.permute.xlu0 %898  ;;  %v427_v38 = vadd.f32 %v425_v14, %v417_v56  ;;  %v1205_v56 = vstv %s2201_s16 }
 0x1af   :  { %v576_v4 = vrot.slane %v575_v63, 2 }
 0x1b2   :  { %v433_v6 = vpop.permute.xlu1 %432  ;;  %v453_v11 = vpop.permute.xlu0 %452 }
 0x1b3   :  { %v434_v50 = vrot.slane %v433_v6, 2  ;;  %v454_v54 = vrot.slane %v453_v11, 2 }
 0x1b4   :  { %1380 = vadd.xlane.f32.xlu1 %v1379_v31  ;;  %v945_v31 = vstv %s2184_s9 }
 0x1b5   :  { %v435_v20 = vsel %vm283_vm3, %v433_v6, %v434_v50  ;;  %v558_v6 = vmul.f32 %v557_v13, %v1953_v57  ;;  %v577_v50 = vsel %vm261_vm14, %v575_v63, %v576_v4  ;;  %v2238_v13 = vsel %vm706_vm2, %v705_v10, %v1887_v47 }
 0x1b6   :  { %v2203_v58 = vpop.permute.xlu1 %736  ;;  %v2205_v59 = vpop.permute.xlu0 %756  ;;  %v437_v49 = vadd.f32 %v435_v20, %v427_v38  ;;  %v468_v38 = vrot.slane %v2021_v8, 2  ;;  %v586_v63 = vrot.slane %v2159_v60, 2  ;;  %v478_v4 = vrot.slane %v2023_v9, 2 }
 0x1b7   :  { %v569_v42 = vadd.f32 %v567_v27, %v558_v6  ;;  %v460_v27 = vmul.f32 %v459_v22, %v1896_v55  ;;  %v622_v20 = vmul.f32 %v621_v30, %v1896_v55  ;;  %v2250_v47 = vmul.f32 %v783_v37, %v1896_v55 }
 0x1b8   :  { %v2253_v10 = vmul.f32 %v945_v31, %v1896_v55  ;;  %v488_v6 = vrot.slane %v2037_v23, 2  ;;  %v2261_v22 = vmul.f32 %v1107_v5, %v1896_v55  ;;  %v469_v30 = vsel %vm250_vm13, %v2021_v8, %v468_v38 }
 0x1b9   :  { %v579_v46 = vadd.f32 %v577_v50, %v569_v42  ;;  %v720_v37 = vmul.f32 %v719_v32, %v1953_v57  ;;  %v587_v31 = vsel %vm272_vm15, %v2159_v60, %v586_v63  ;;  %v498_v50 = vrot.slane %v2039_v24, 2 }
 0x1ba   :  { %v443_v21 = vpop.permute.xlu1 %442  ;;  %v2220_v51 = vpop.permute.xlu0 %1060  ;;  %v2280_v8 = vmul.f32 %v1043_v44, %v1953_v57  ;;  %v2283_v32 = vmul.f32 %v1205_v56, %v1953_v57  ;;  %v630_v60 = vrot.slane %v2029_v16, 2  ;;  %v738_v44 = vrot.slane %v2203_v58, 2 }
 0x1bb   :  { %v444_v7 = vrot.slane %v443_v21, 2  ;;  %v589_v5 = vadd.f32 %v587_v31, %v579_v46  ;;  %v499_v56 = vsel %vm283_vm3, %v2039_v24, %v498_v50  ;;  %v792_v31 = vrot.slane %v2045_v33, 2 }
 0x1bc   :  { %v802_v50 = vrot.slane %v2047_v34, 2 }
 0x1bd   :  { %v445_v14 = vsel %vm294_vm4, %v443_v21, %v444_v7  ;;  %v455_v7 = vsel %vm305_vm6, %v453_v11, %v454_v54  ;;  %v2244_v21 = vsel %vm868_vm5, %v867_v39, %v2015_v2  ;;  %v2264_v39 = vmul.f32 %v1269_v17, %v1896_v55 }
 0x1be   :  { %v447_v26 = vadd.f32 %v445_v14, %v437_v49  ;;  %v2234_v43 = vpop.permute.xlu1 %746  ;;  %v615_v25 = vpop.permute.xlu0 %614  ;;  %v596_v49 = vrot.slane %v2167_v45, 2  ;;  %v2274_v14 = vmul.f32 %v881_v62, %v1953_v57  ;;  %v479_v17 = vsel %vm261_vm14, %v2023_v9, %v478_v4 }
 0x1bf   :  { %v728_v55 = vrot.slane %v2155_v48, 2  ;;  %v508_v62 = vrot.slane %v2083_v1, 2  ;;  %v616_v46 = vrot.slane %v615_v25, 2  ;;  %v640_v57 = vrot.slane %v2031_v18, 2 }
 0x1c0   :  { %v457_v28 = vadd.f32 %v455_v7, %v447_v26  ;;  %v489_v26 = vsel %vm272_vm15, %v2037_v23, %v488_v6  ;;  %v597_v9 = vsel %vm283_vm3, %v2167_v45, %v596_v49  ;;  %v518_v4 = vrot.slane %v2085_v3, 2 }
 0x1c1   :  { %v729_v6 = vsel %vm250_vm13, %v2155_v48, %v728_v55  ;;  %v739_v48 = vsel %vm261_vm14, %v2203_v58, %v738_v44  ;;  %v617_v55 = vsel %vm305_vm6, %v615_v25, %v616_v46 }
 0x1c2   :  { %v461_v54 = vadd.f32 %v460_v27, %v457_v28  ;;  %v2256_v11 = vpop.permute.xlu1 %1050  ;;  %v2258_v2 = vpop.permute.xlu0 %918  ;;  %v599_v28 = vadd.f32 %v597_v9, %v589_v5  ;;  %v509_v5 = vsel %vm294_vm4, %v2083_v1, %v508_v62  ;;  %v519_v9 = vsel %vm305_vm6, %v2085_v3, %v518_v4 }
 0x1c3   :  { %v900_v62 = vrot.slane %v2177_v0, 2  ;;  %v2327_v3 = vsel %vm261_vm14, %v2047_v34, %v802_v50  ;;  %v964_v34 = vrot.slane %v2071_v53, 2 }
 0x1c4   :  { %v471_v42 = vadd.f32 %v469_v30, %v461_v54  ;;  %v748_v54 = vrot.slane %v2234_v43, 2  ;;  %v631_v30 = vsel %vm250_vm13, %v2029_v16, %v630_v60 }
 0x1c6   :  { %v481_v38 = vadd.f32 %v479_v17, %v471_v42  ;;  %v605_v63 = vpop.permute.xlu1 %604  ;;  %v2289_v7 = vpop.permute.xlu0 %1222  ;;  %v749_v1 = vsel %vm272_vm15, %v2234_v43, %v748_v54  ;;  %v758_v43 = vrot.slane %v2205_v59, 2 }
 0x1c7   :  { %v606_v27 = vrot.slane %v605_v63, 2 }
 0x1c8   :  { %v491_v23 = vadd.f32 %v489_v26, %v481_v38  ;;  %v650_v26 = vrot.slane %v2057_v40, 2  ;;  %v731_v38 = vadd.f32 %v729_v6, %v720_v37 }
 0x1c9   :  { %v607_v45 = vsel %vm294_vm4, %v605_v63, %v606_v27  ;;  %v660_v63 = vrot.slane %v2059_v41, 2  ;;  %v890_v27 = vrot.slane %v2162_v12, 2 }
 0x1ca   :  { %v609_v49 = vadd.f32 %v607_v45, %v599_v28  ;;  %v909_v42 = vpop.permute.xlu1 %908  ;;  %v777_v17 = vpop.permute.xlu0 %776  ;;  %v501_v24 = vadd.f32 %v499_v56, %v491_v23  ;;  %v741_v58 = vadd.f32 %v739_v48, %v731_v38  ;;  %v641_v56 = vsel %vm261_vm14, %v2031_v18, %v640_v57 }
 0x1cb   :  { %v793_v28 = vsel %vm250_vm13, %v2045_v33, %v792_v31  ;;  %v954_v23 = vrot.slane %v2069_v52, 2  ;;  %v651_v54 = vsel %vm272_vm15, %v2057_v40, %v650_v26  ;;  %v661_v18 = vsel %vm283_vm3, %v2059_v41, %v660_v63 }
 0x1cc   :  { %v619_v16 = vadd.f32 %v617_v55, %v609_v49  ;;  %v511_v60 = vadd.f32 %v509_v5, %v501_v24  ;;  %v751_v4 = vadd.f32 %v749_v1, %v741_v58  ;;  %v891_v33 = vsel %vm250_vm13, %v2162_v12, %v890_v27 }
 0x1cd   :  { %v910_v57 = vrot.slane %v909_v42, 2  ;;  %v670_v45 = vrot.slane %v2105_v35, 2  ;;  %v901_v31 = vsel %vm261_vm14, %v2177_v0, %v900_v62  ;;  %v759_v40 = vsel %vm283_vm3, %v2205_v59, %v758_v43 }
 0x1ce   :  { %v623_v44 = vadd.f32 %v622_v20, %v619_v16  ;;  %v1213_v25 = vpop.permute.xlu1 %1212  ;;  %v2319_v46 = vpop.permute.xlu0 %1080  ;;  %v521_v37 = vadd.f32 %v519_v9, %v511_v60  ;;  %v1052_v41 = vrot.slane %v2256_v11, 2  ;;  %v778_v24 = vrot.slane %v777_v17, 2 }
 0x1cf   :  { %v2347_v50 = vsel %vm250_vm13, %v2069_v52, %v954_v23  ;;  %v893_v5 = vadd.f32 %v891_v33, %v2274_v14  ;;  %v761_v0 = vadd.f32 %v759_v40, %v751_v4  ;;  %v812_v55 = vrot.slane %v2093_v15, 2 }
 0x1d0   :  { %v633_v20 = vadd.f32 %v631_v30, %v623_v44  ;;  %v547_v6 = vmul.f32 %v2232_v29, %v521_v37  ;;  %v680_v26 = vrot.slane %v2129_v61, 2  ;;  %v911_v38 = vsel %vm272_vm15, %v909_v42, %v910_v57 }
 0x1d1   :  { %v671_v16 = vsel %vm294_vm4, %v2105_v35, %v670_v45  ;;  %v903_v60 = vadd.f32 %v901_v31, %v893_v5  ;;  %v1053_v14 = vsel %vm250_vm13, %v2256_v11, %v1052_v41  ;;  %v920_v1 = vrot.slane %v2258_v2, 2 }
 0x1d2   :  { %v643_v30 = vadd.f32 %v641_v56, %v633_v20  ;;  %v767_v49 = vpop.permute.xlu1 %766  ;;  %549 = vrot.lane.b32.xlu0 %v547_v6, %s1749_s17  ;;  %v939_v29 = vpop.permute.xlu0 %938  ;;  %v779_v62 = vsel %vm305_vm6, %v777_v17, %v778_v24  ;;  %v1214_v58 = vrot.slane %v1213_v25, 2  ;;  %v2364_v42 = vsel %vm261_vm14, %v2071_v53, %v964_v34 }
 0x1d3   :  { %v768_v12 = vrot.slane %v767_v49, 2  ;;  %v913_v44 = vadd.f32 %v911_v38, %v903_v60  ;;  %v822_v56 = vrot.slane %v2095_v19, 2  ;;  %v681_v43 = vsel %vm305_vm6, %v2129_v61, %v680_v26 }
 0x1d4   :  { %v653_v48 = vadd.f32 %v651_v54, %v643_v30  ;;  %v1062_v23 = vrot.slane %v2220_v51, 2  ;;  %v813_v4 = vsel %vm272_vm15, %v2093_v15, %v812_v55  ;;  %v1055_v17 = vadd.f32 %v1053_v14, %v2280_v8 }
 0x1d5   :  { %v769_v59 = vsel %vm294_vm4, %v767_v49, %v768_v12  ;;  %v1215_v33 = vsel %vm250_vm13, %v1213_v25, %v1214_v58  ;;  %v940_v57 = vrot.slane %v939_v29, 2  ;;  %v832_v34 = vrot.slane %v2107_v36, 2 }
 0x1d6   :  { %v771_v63 = vadd.f32 %v769_v59, %v761_v0  ;;  %v1071_v9 = vpop.permute.xlu1 %1070  ;;  %v2356_v52 = vpop.permute.xlu0 %1242  ;;  %v663_v27 = vadd.f32 %v661_v18, %v653_v48  ;;  %v921_v18 = vsel %vm283_vm3, %v2258_v2, %v920_v1  ;;  %v1063_v8 = vsel %vm261_vm14, %v2220_v51, %v1062_v23  ;;  %v2538_v48 = vld [vmem:[#allocation25_spill] sm:$0xff]  ;;  %v2540_v59 = vld [vmem:[#allocation35_spill] sm:$0xff] }
 0x1d7   :  { %v1072_v11 = vrot.slane %v1071_v9, 2  ;;  %v923_v31 = vadd.f32 %v921_v18, %v913_v44  ;;  %v1217_v2 = vadd.f32 %v1215_v33, %v2283_v32  ;;  %v1065_v40 = vadd.f32 %v1063_v8, %v1055_v17 }
 0x1d8   :  { %v781_v35 = vadd.f32 %v779_v62, %v771_v63  ;;  %v673_v37 = vadd.f32 %v671_v16, %v663_v27  ;;  %v1082_v51 = vrot.slane %v2319_v46, 2  ;;  %v941_v12 = vsel %vm305_vm6, %v939_v29, %v940_v57 }
 0x1d9   :  { %v1073_v30 = vsel %vm272_vm15, %v1071_v9, %v1072_v11  ;;  %v1116_v0 = vrot.slane %v2538_v48, 2  ;;  %v842_v16 = vrot.slane %v2540_v59, 2  ;;  %v1244_v58 = vrot.slane %v2356_v52, 2 }
 0x1da   :  { %v785_v20 = vadd.f32 %v2250_v47, %v781_v35  ;;  %v929_v53 = vpop.permute.xlu1 %928  ;;  %v1101_v6 = vpop.permute.xlu0 %1100  ;;  %v683_v54 = vadd.f32 %v681_v43, %v673_v37  ;;  %v1224_v47 = vrot.slane %v2289_v7, 2  ;;  %v1075_v32 = vadd.f32 %v1073_v30, %v1065_v40  ;;  %v2545_v40 = vld [vmem:[#allocation28_spill] sm:$0xff] }
 0x1db   :  { %v930_v61 = vrot.slane %v929_v53, 2  ;;  %v1083_v62 = vsel %vm283_vm3, %v2319_v46, %v1082_v51  ;;  %v1102_v44 = vrot.slane %v1101_v6, 2  ;;  %v843_v11 = vsel %vm305_vm6, %v2540_v59, %v842_v16  ;;  %v2542_v46 = vld [vmem:[#allocation30_spill] sm:$0xff]  ;;  %v2546_v51 = vld [vmem:[#allocation29_spill] sm:$0xff] }
 0x1dc   :  { %v795_v45 = vadd.f32 %v793_v28, %v785_v20  ;;  %v709_v15 = vmul.f32 %v2238_v13, %v683_v54  ;;  %v823_v13 = vsel %vm283_vm3, %v2095_v19, %v822_v56  ;;  %v1225_v60 = vsel %vm261_vm14, %v2289_v7, %v1224_v47  ;;  %v2543_v47 = vld [vmem:[#allocation26_spill] sm:$0xff] }
 0x1dd   :  { %v931_v49 = vsel %vm294_vm4, %v929_v53, %v930_v61  ;;  %v833_v19 = vsel %vm294_vm4, %v2107_v36, %v832_v34  ;;  %v1227_v9 = vadd.f32 %v1225_v60, %v1217_v2  ;;  %v1085_v56 = vadd.f32 %v1083_v62, %v1075_v32  ;;  %v2547_v32 = vld [vmem:[#allocation34_spill] sm:$0xff] }
 0x1de   :  { %v805_v25 = vadd.f32 %v2327_v3, %v795_v45  ;;  %v933_v41 = vadd.f32 %v931_v49, %v923_v31  ;;  %v1233_v24 = vpop.permute.xlu1 %1232  ;;  %711 = vrot.lane.b32.xlu0 %v709_v15, %s1750_s2  ;;  %v1263_v28 = vpop.permute.xlu0 %1262  ;;  %v2539_v3 = vld [vmem:[#allocation27_spill] sm:$0xff]  ;;  %v994_v17 = vrot.slane %v2542_v46, 2  ;;  %v1245_v33 = vsel %vm283_vm3, %v2356_v52, %v1244_v58  ;;  %v2544_v49 = vld [vmem:[#allocation33_spill] sm:$0xff] }
 0x1df   :  { %v1234_v5 = vrot.slane %v1233_v24, 2  ;;  %v974_v38 = vrot.slane %v2539_v3, 2  ;;  %v1103_v57 = vsel %vm305_vm6, %v1101_v6, %v1102_v44  ;;  %v1264_v61 = vrot.slane %v1263_v28, 2 }
 0x1e0   :  { %v815_v55 = vadd.f32 %v813_v4, %v805_v25  ;;  %v943_v26 = vadd.f32 %v941_v12, %v933_v41  ;;  %v1126_v30 = vrot.slane %v2543_v47, 2  ;;  %v1004_v2 = vrot.slane %v2544_v49, 2 }
 0x1e1   :  { %v1235_v63 = vsel %vm272_vm15, %v1233_v24, %v1234_v5  ;;  %v975_v36 = vsel %vm272_vm15, %v2539_v3, %v974_v38  ;;  %v1136_v52 = vrot.slane %v2545_v40, 2  ;;  %v1278_v12 = vrot.slane %v2546_v51, 2 }
 0x1e2   :  { %v947_v29 = vadd.f32 %v2253_v10, %v943_v26  ;;  %v1091_v27 = vpop.permute.xlu1 %1090  ;;  %v2399_v14 = vpop.permute.xlu0 %1306  ;;  %v825_v1 = vadd.f32 %v823_v13, %v815_v55  ;;  %v1237_v37 = vadd.f32 %v1235_v63, %v1227_v9  ;;  %v2541_v10 = vld [vmem:[#allocation32_spill] sm:$0xff]  ;;  %v995_v5 = vsel %vm294_vm4, %v2542_v46, %v994_v17 }
 0x1e3   :  { %v1092_v35 = vrot.slane %v1091_v27, 2  ;;  %v984_v23 = vrot.slane %v2541_v10, 2  ;;  %v1265_v55 = vsel %vm305_vm6, %v1263_v28, %v1264_v61  ;;  %v1288_v26 = vrot.slane %v2547_v32, 2 }
 0x1e4   :  { %v957_v7 = vadd.f32 %v2347_v50, %v947_v29  ;;  %v835_v43 = vadd.f32 %v833_v19, %v825_v1  ;;  %v1247_v31 = vadd.f32 %v1245_v33, %v1237_v37  ;;  %v1127_v16 = vsel %vm261_vm14, %v2543_v47, %v1126_v30  ;;  %v2549_v1 = vld [vmem:[#allocation31_spill] sm:$0xff] }
 0x1e5   :  { %v1093_v4 = vsel %vm294_vm4, %v1091_v27, %v1092_v35  ;;  %v1005_v60 = vsel %vm305_vm6, %v2544_v49, %v1004_v2  ;;  %v1137_v63 = vsel %vm272_vm15, %v2545_v40, %v1136_v52  ;;  %v1279_v27 = vsel %vm250_vm13, %v2546_v51, %v1278_v12 }
 0x1e6   :  { %v967_v20 = vadd.f32 %v2364_v42, %v957_v7  ;;  %v1095_v53 = vadd.f32 %v1093_v4, %v1085_v56  ;;  %v1253_v54 = vpop.permute.xlu1 %1252  ;;  %v2413_v50 = vpop.permute.xlu0 %1164  ;;  %v845_v18 = vadd.f32 %v843_v11, %v835_v43  ;;  %v985_v42 = vsel %vm283_vm3, %v2541_v10, %v984_v23 }
 0x1e7   :  { %v1254_v34 = vrot.slane %v1253_v54, 2  ;;  %v1298_v62 = vrot.slane %v2549_v1, 2  ;;  %v1289_v35 = vsel %vm261_vm14, %v2547_v32, %v1288_v26  ;;  %v1166_v43 = vrot.slane %v2413_v50, 2 }
 0x1e8   :  { %v1105_v45 = vadd.f32 %v1103_v57, %v1095_v53  ;;  %v871_v15 = vmul.f32 %v2244_v21, %v845_v18  ;;  %v977_v8 = vadd.f32 %v975_v36, %v967_v20  ;;  %v1117_v21 = vsel %vm250_vm13, %v2538_v48, %v1116_v0  ;;  %v2548_v48 = vld [vmem:[#allocation36_spill] sm:$0xff] }
 0x1e9   :  { %v1255_v25 = vsel %vm294_vm4, %v1253_v54, %v1254_v34  ;;  %v1146_v0 = vrot.slane %v2548_v48, 2  ;;  %v1299_v17 = vsel %vm272_vm15, %v2549_v1, %v1298_v62  ;;  %v1167_v61 = vsel %vm305_vm6, %v2413_v50, %v1166_v43  ;;  %v373_v43 = vld [vmem:[#allocation11] ss:$8 sm:$0x3] }
 0x1ea   :  { %v1109_v6 = vadd.f32 %v2261_v22, %v1105_v45  ;;  %v1257_v41 = vadd.f32 %v1255_v25, %v1247_v31  ;;  %v1155_v24 = vpop.permute.xlu1 %1154  ;;  %873 = vrot.lane.b32.xlu0 %v871_v15, %s1751_s20  ;;  %v987_v13 = vadd.f32 %v985_v42, %v977_v8  ;;  %v1190_v22 = vpop.permute.xlu0 %1189 }
 0x1eb   :  { %v1156_v58 = vrot.slane %v1155_v24, 2  ;;  %v1147_v56 = vsel %vm283_vm3, %v2548_v48, %v1146_v0  ;;  %v1191_v53 = vrot.slane %v1190_v22, 6 }
 0x1ec   :  { %v1119_v3 = vadd.f32 %v1117_v21, %v1109_v6  ;;  %v1267_v38 = vadd.f32 %v1265_v55, %v1257_v41  ;;  %v997_v59 = vadd.f32 %v995_v5, %v987_v13  ;;  %v2550_v13 = vld [vmem:[#allocation37_spill] sm:$0xff]  ;;  %v310_v5 = vstv %s1474_s22 }
 0x1ed   :  { %v1157_v20 = vsel %vm294_vm4, %v1155_v24, %v1156_v58  ;;  %v1193_v15 = vsel %vm1192_vm8, %v1191_v53, %v1190_v22  ;;  %v2552_v53 = vld [vmem:[#allocation23_spill] sm:$0xff] }
 0x1ee   :  { %v1271_v28 = vadd.f32 %v2264_v39, %v1267_v38  ;;  %v1129_v19 = vadd.f32 %v1127_v16, %v1119_v3  ;;  %v1028_v29 = vpop.permute.xlu1 %1027  ;;  %v1007_v9 = vadd.f32 %v1005_v60, %v997_v59  ;;  %v1308_v39 = vrot.slane %v2399_v14, 2  ;;  %v1352_v11 = vpop.permute.xlu0 %1351  ;;  %v1612_v3 = vld [vmem:[#allocation2 + $0x6] sm:$0x3f] }
 0x1ef   :  { %v1029_v44 = vrot.slane %v1028_v29, 6  ;;  %v1353_v8 = vrot.slane %v1352_v11, 6  ;;  %v311_v38 = vmul.f32 %v1612_v3, %v310_v5 }
 0x1f0   :  { %v1281_v7 = vadd.f32 %v1279_v27, %v1271_v28  ;;  %v1139_v37 = vadd.f32 %v1137_v63, %v1129_v19  ;;  %v1309_v57 = vsel %vm283_vm3, %v2399_v14, %v1308_v39  ;;  %v1385_v39 = vstv %s1565_s27 }
 0x1f1   :  { %v1031_v36 = vsel %vm1030_vm7, %v1029_v44, %v1028_v29  ;;  %v1355_v50 = vsel %vm1354_vm9, %v1353_v8, %v1352_v11 }
 0x1f2   :  { %v1149_v10 = vadd.f32 %v1147_v56, %v1139_v37  ;;  %v1033_v23 = vmul.f32 %v1031_v36, %v1007_v9  ;;  %v1317_v4 = vpop.permute.xlu1 %1316  ;;  %v1291_v46 = vadd.f32 %v1289_v35, %v1281_v7  ;;  %v292_v2 = vpop.permute.xlu0 %291  ;;  %v1394_v36 = vstv %s1566_s28 }
 0x1f3   :  { %v1318_v54 = vrot.slane %v1317_v4, 2  ;;  %v293_v52 = vrot.slane %v292_v2, 2 }
 0x1f4   :  { %v1159_v18 = vadd.f32 %v1157_v20, %v1149_v10  ;;  %v1301_v33 = vadd.f32 %v1299_v17, %v1291_v46  ;;  %1035 = vrot.lane.b32.xlu0 %v1033_v23, %s1752_s21  ;;  %v2551_v17 = vld [vmem:[#allocation22_spill] sm:$0xff] }
 0x1f5   :  { %v1319_v47 = vsel %vm294_vm4, %v1317_v4, %v1318_v54  ;;  %v295_v12 = vsel %vm294_vm4, %v292_v2, %v293_v52  ;;  %v378_v20 = vrot.slane %v373_v43, %v2551_v17  ;;  %v382_v54 = vrot.slane %v373_v43, %v2552_v53  ;;  %v2553_v2 = vld [vmem:[#allocation24_spill] sm:$0xff] }
 0x1f6   :  { %v1169_v34 = vadd.f32 %v1167_v61, %v1159_v18  ;;  %v1311_v45 = vadd.f32 %v1309_v57, %v1301_v33  ;;  %v1327_v31 = vpop.permute.xlu1 %1326  ;;  %v318_v16 = vpop.permute.xlu0 %317 }
 0x1f7   :  { %v1328_v30 = vrot.slane %v1327_v31, 2  ;;  %v319_v0 = vrot.slane %v318_v16, 2 }
 0x1f8   :  { %v1195_v42 = vmul.f32 %v1193_v15, %v1169_v34  ;;  %v1321_v49 = vadd.f32 %v1319_v47, %v1311_v45 }
 0x1f9   :  { %v1329_v25 = vsel %vm305_vm6, %v1327_v31, %v1328_v30  ;;  %v320_v28 = vsel %vm250_vm13, %v318_v16, %v319_v0  ;;  %v383_v31 = vcombine.low %v378_v20, %v382_v54  ;;  %vm1038_vm13 = vcmask 1014784  }
 0x1fa   :  { %v1331_v40 = vadd.f32 %v1329_v25, %v1321_v49  ;;  %v281_v14 = vpop.permute.xlu1 %280  ;;  %1197 = vrot.lane.b32.xlu0 %v1195_v42, %s1753_s23  ;;  %v338_v60 = vpop.permute.xlu0 %337 }
 0x1fb   :  { %v282_v6 = vrot.slane %v281_v14, 2  ;;  %v339_v27 = vrot.slane %v338_v60, 2  ;;  %v390_v25 = vrot.slane %v383_v31, %v2553_v2 }
 0x1fc   :  { %v1357_v41 = vmul.f32 %v1355_v50, %v1331_v40 }
 0x1fd   :  { %v284_v24 = vsel %vm283_vm3, %v281_v14, %v282_v6  ;;  %v340_v35 = vsel %vm272_vm15, %v338_v60, %v339_v27  ;;  %vm1362_vm15 = vcmask 998400  }
 0x1fe   :  { %v286_v21 = vadd.f32 %v284_v24, %v2550_v13  ;;  %v303_v51 = vpop.permute.xlu1 %302  ;;  %1359 = vrot.lane.b32.xlu0 %v1357_v41, %s1754_s26  ;;  %v348_v48 = vpop.permute.xlu0 %347 }
 0x1ff   :  { %v304_v55 = vrot.slane %v303_v51, 2  ;;  %v349_v7 = vrot.slane %v348_v48, 2 }
 0x200   :  { %v297_v32 = vadd.f32 %v295_v12, %v286_v21 }
 0x201   :  { %v306_v26 = vsel %vm305_vm6, %v303_v51, %v304_v55  ;;  %v350_v23 = vsel %vm283_vm3, %v348_v48, %v349_v7 }
 0x202   :  { %v308_v22 = vadd.f32 %v306_v26, %v297_v32  ;;  %v328_v63 = vpop.permute.xlu1 %327  ;;  %v358_v9 = vpop.permute.xlu0 %357 }
 0x203   :  { %v329_v19 = vrot.slane %v328_v63, 2  ;;  %v359_v11 = vrot.slane %v358_v9, 2 }
 0x204   :  { %v312_v59 = vadd.f32 %v311_v38, %v308_v22 }
 0x205   :  { %v330_v1 = vsel %vm261_vm14, %v328_v63, %v329_v19  ;;  %v360_v57 = vsel %vm294_vm4, %v358_v9, %v359_v11  ;;  %vm1200_vm14 = vcmask 1006592  }
 0x206   :  { %v322_v29 = vadd.f32 %v320_v28, %v312_v59  ;;  %v368_v44 = vpop.permute.xlu0 %367 }
 0x207   :  { %v369_v61 = vrot.slane %v368_v44, 2 }
 0x208   :  { %v332_v62 = vadd.f32 %v330_v1, %v322_v29  ;;  %v1755_v1 = vmov 269488144  }
 0x209   :  { %v370_v47 = vsel %vm305_vm6, %v368_v44, %v369_v61 }
 0x20a   :  { %v342_v56 = vadd.f32 %v340_v35, %v332_v62  ;;  %v1406_v62 = vunpack.c.l.s4 %v1755_v1 }
 0x20c   :  { %v352_v46 = vadd.f32 %v350_v23, %v342_v56  ;;  %v1756_v56 = vmov 1966171168  }
 0x20e   :  { %v362_v45 = vadd.f32 %v360_v57, %v352_v46 }
 0x210   :  { %v372_v49 = vadd.f32 %v370_v47, %v362_v45  ;;  %v1614_v47 = vld [vmem:[#allocation12 + $0x8] sm:$0xff] }
 0x212   :  { %v392_v41 = vmul.f32 %v390_v25, %v372_v49 }
 0x241   :  { %v1381_v58 = vpop.xlane.xlu1 %1380 }
 0x242   :  { %v1383_v37 = vmul.f32 0.00390625, %v1381_v58 }
 0x244   :  { %v550_v10 = vpop.permute.xlu0 %549  ;;  %v1386_v4 = vmul.f32 %v1385_v39, %v1383_v37  ;;  %v1395_v18 = vmul.f32 %v1394_v36, %v1383_v37  ;;  %v1407_v37 = vunpack.c.0.s8 %v1406_v62  ;;  %v1416_v39 = vunpack.c.l.s4 %v1756_v56  ;;  %v2554_v36 = vld [vmem:[#allocation21_spill] sm:$0xff] }
 0x245   :  { %v551_v30 = vrot.slane %v550_v10, 2 }
 0x246   :  { %v1387_v34 = vsub.f32 0.0, %v1386_v4  ;;  %v1396_v15 = vsub.f32 0.0, %v1395_v18  ;;  %v1417_v23 = vunpack.c.0.s8 %v1416_v39 }
 0x247   :  { %v553_v52 = vsel %vm552_vm10, %v550_v10, %v551_v30  ;;  %v1410_v10 = vsub.s32 %v1407_v37, %v2554_v36 }
 0x248   :  { %v1388_v42 = vmul.f32 1.442695, %v1387_v34  ;;  %v1397_v40 = vmul.f32 1.442695, %v1396_v15  ;;  %v555_v21 = vadd.f32 %v553_v52, %v392_v41  ;;  %v1420_v4 = vsub.s32 %v1417_v23, %v2554_v36  ;;  %v1613_v15 = vld [vmem:[#allocation12] sm:$0xff] }
 0x24a   :  { %1600 = vpow2.f32 %v1388_v42 }
 0x24b   :  { %1602 = vpow2.f32 %v1397_v40 }
 0x250   :  { %v712_v33 = vpop.permute.xlu0 %711 }
 0x251   :  { %v713_v14 = vrot.slane %v712_v33, 2 }
 0x253   :  { %v715_v24 = vsel %vm714_vm11, %v712_v33, %v713_v14 }
 0x254   :  { %v717_v12 = vadd.f32 %v715_v24, %v555_v21  ;;  %v1601_v59 = vpop.eup %1600 }
 0x255   :  { %v1603_v60 = vpop.eup %1602  ;;  %v1390_v63 = vadd.f32 1.0, %v1601_v59 }
 0x256   :  { %v1399_v19 = vadd.f32 1.0, %v1603_v60 }
 0x257   :  { %1604 = vrcp.f32 %v1390_v63 }
 0x258   :  { %1606 = vrcp.f32 %v1399_v19 }
 0x25c   :  { %v874_v8 = vpop.permute.xlu0 %873 }
 0x25d   :  { %v875_v6 = vrot.slane %v874_v8, 2 }
 0x25f   :  { %v877_v51 = vsel %vm876_vm12, %v874_v8, %v875_v6 }
 0x260   :  { %v879_v26 = vadd.f32 %v877_v51, %v717_v12 }
 0x261   :  { %v1605_v27 = vpop.eup %1604 }
 0x262   :  { %v1607_v58 = vpop.eup %1606 }
 0x263   :  { %v1402_v7 = vadd.f32 %v1607_v58, %v1605_v27 }
 0x265   :  { %v1403_v43 = vmul.f32 0.5, %v1402_v7 }
 0x266   :  { %v1036_v50 = vpop.permute.xlu0 %1035 }
 0x267   :  { %v1037_v13 = vrot.slane %v1036_v50, 2  ;;  %v1411_v11 = vrot.slane %v1403_v43, %v1410_v10 }
 0x269   :  { %v1039_v55 = vsel %vm1038_vm13, %v1036_v50, %v1037_v13 }
 0x26a   :  { %v1041_v38 = vadd.f32 %v1039_v55, %v879_v26 }
 0x26c   :  { %v1198_v5 = vpop.permute.xlu0 %1197 }
 0x26d   :  { %v1199_v32 = vrot.slane %v1198_v5, 2 }
 0x26f   :  { %v1201_v3 = vsel %vm1200_vm14, %v1198_v5, %v1199_v32 }
 0x270   :  { %v1360_v22 = vpop.permute.xlu0 %1359  ;;  %v1203_v48 = vadd.f32 %v1201_v3, %v1041_v38 }
 0x271   :  { %v1361_v16 = vrot.slane %v1360_v22, 2 }
 0x273   :  { %v1363_v0 = vsel %vm1362_vm15, %v1360_v22, %v1361_v16 }
 0x274   :  { %v1365_v28 = vadd.f32 %v1363_v0, %v1203_v48 }
 0x276   :  { %v1366_v29 = vsub.f32 0.0, %v1365_v28 }
 0x278   :  { %v1367_v9 = vmul.f32 1.442695, %v1366_v29 }
 0x27a   :  { %1608 = vpow2.f32 %v1367_v9 }
 0x284   :  { %v1609_v44 = vpop.eup %1608 }
 0x285   :  { %v1369_v35 = vadd.f32 1.0, %v1609_v44 }
 0x287   :  { %1610 = vrcp.f32 %v1369_v35 }
 0x291   :  { %v1611_v46 = vpop.eup %1610 }
 0x292   :  { %v1413_v20 = vmul.f32 %v1611_v46, %v1411_v11 }
 0x294   :  { %v1421_v54 = vrot.slane %v1413_v20, %v1420_v4 }
 0x296   :  { %v1422_v18 = vcombine.high %v1421_v54, %v1421_v54  ;;  %v1426_v33 = vrot.slane %v1421_v54, %v2551_v17  ;;  %v1430_v57 = vrot.slane %v1421_v54, %v2552_v53 }
 0x298   :  { %v1434_v61 = vrot.slane %v1422_v18, %v2551_v17  ;;  %v1438_v34 = vrot.slane %v1422_v18, %v2552_v53  ;;  %v1439_v45 = vcombine.low %v1426_v33, %v1430_v57 }
 0x29a   :  { %v1440_v31 = vcombine.low %v1434_v61, %v1438_v34  ;;  %v1443_v8 = vmul.f32 %v1613_v15, %v1439_v45 }
 0x29c   :  { %v1444_v30 = vmul.f32 %v1614_v47, %v1440_v31  ;;  %1445 = vst [vmem:[#allocation14] sm:$0xff] %v1443_v8 }
 0x29e   :  { %1446 = vst [vmem:[#allocation14 + $0x8] sm:$0xff] %v1444_v30 }
 0x29f   :  { %1704 = shalt.err (!%p1701_p5)
}
 0x2a0   :  { %s1705_s10 = scalar_lea.hbm %s2499_s5, 256 }
 0x2a1   :  { %p1706_p6 = scmp.ne.s32.totalorder %s2499_s5, %s1705_s10  ;;  %p1709_p7 = scmp.lt.u32.totalorder %s1705_s10, %s2499_s5 }
 0x2a3   :  { %p1711_p8 = pnand %p1709_p7, %p1706_p6 }
 0x2a5   :  { %1714 = shalt.err (!%p1711_p8)
}
 0x2a6   :  { %1458 = dma.vmem_to_hbm [thread:$0]  %s1453_s30, 256, %s2499_s5, [#allocation5], %s1732_s3, %s1732_s3, %s1733_s6  }
 0x2a7   :  { %1725 = dma.done.wait [#allocation5], 256  }
 0x2a8   :  { %1726 = vsyncadd [#allocation5], 4294967040 }
 0x2a9   :  { %1462 = vsyncpa [#allocation4], 1 }
 0x2aa   :  { %1463 = vsyncpa [#allocation13], 1 }
 0x2ab   :  { %1464 = vsyncpa [#allocation5], 1 }
 0x2ac   :  { %1465 = vsyncpa [#allocation6], 1 }
 0x2ad   :  { %1466 = vsyncpa [#allocation7], 1 }
 0x2ae   :  { %1467 = vsyncpa [#allocation10], 1 }

</bundles_post_ra>
